<compile_context>
chip_gen: v5e
topology: v5e:2x2
jax: 0.10.0
libtpu: 0.0.40
codegen_flags: <defaults>
</compile_context>

<pallas_src>
import jax
import jax.numpy as jnp
from jax.experimental import pallas as pl
from jax.experimental.pallas import tpu as pltpu

F_PAD = 128  # lane-dense padding for every feature dimension


# ---------------------------------------------------------------------------
# Fused Pallas kernel (one grid step == one graph)
# ---------------------------------------------------------------------------

def make_fused_kernel(num_sage_layers):
    """[mean-SAGEConv + ReLU] * L  ->  Linear -> BN(eval) -> ReLU -> Linear."""

    def kernel(*refs):
        adj_ref, h0_ref, invdeg_ref = refs[0], refs[1], refs[2]
        idx = 3
        sage_refs = refs[idx: idx + 2 * num_sage_layers]
        idx += 2 * num_sage_layers
        w1_ref, sc1_ref, sh1_ref, w2_ref, b2_ref = refs[idx: idx + 5]
        o_ref = refs[idx + 5]
        cat_ref = refs[idx + 6]                        # (N, 2*F_PAD) bf16 VMEM scratch

        adj = adj_ref[...]                             # (N, N) bf16 (0/1 exact)
        inv_deg = invdeg_ref[...]                      # (N, 1) f32, precomputed host-side

        h_bf = h0_ref[...]                             # (N, F_PAD) bf16
        for l in range(num_sage_layers):
            w_cat_ref, b_ref = sage_refs[2 * l], sage_refs[2 * l + 1]
            # mean aggregation over in-neighbors: f32 MXU accumulate, f32 1/deg scaling
            h_neigh = jnp.dot(adj, h_bf, preferred_element_type=jnp.float32) * inv_deg
            # merged self + neighbor projection: one MXU matmul with K = 2*F_PAD.
            # Halves written into the persistent scratch (no fresh concat buffer).
            cat_ref[:, :F_PAD] = h_bf
            cat_ref[:, F_PAD:] = h_neigh.astype(jnp.bfloat16)
            h = jnp.dot(cat_ref[...], w_cat_ref[...],
                        preferred_element_type=jnp.float32) + b_ref[...]
            h = jnp.maximum(h, 0.0)                    # ReLU (dropout identity in eval)
            h_bf = h.astype(jnp.bfloat16)

        # MLP head: Linear1 -> eval-BN (f32 scale, f32 shift incl. folded bias) -> ReLU
        h = jnp.dot(h_bf, w1_ref[...],
                    preferred_element_type=jnp.float32) * sc1_ref[...] + sh1_ref[...]
        h = jnp.maximum(h, 0.0)
        o_ref[...] = (jnp.dot(h.astype(jnp.bfloat16), w2_ref[...],
                              preferred_element_type=jnp.float32) + b2_ref[...])

    return kernel


# ---------------------------------------------------------------------------
# Wrapper: one pallas_call, grid over graphs ("parallel"), weights VMEM-resident
# ---------------------------------------------------------------------------

def sage_forward_batched(adj, inputs, kparams):
    """adj: (B, N, N) 0/1, inputs: (B, N, f_in)."""
    B, N, _ = adj.shape
    f_in = inputs.shape[-1]
    assert f_in <= F_PAD and adj.shape == (B, N, N)

    # Host-side prep: bf16 adjacency / features, f32 degree (exact) and 1/deg.
    adj_f32 = adj.astype(jnp.float32)
    deg = jnp.sum(adj_f32, axis=-1, keepdims=True)                    # (B, N, 1) f32
    inv_deg = jnp.where(deg > 0.0, 1.0 / jnp.maximum(deg, 1.0), 0.0)
    adj_bf = adj_f32.astype(jnp.bfloat16)
    h0 = jnp.pad(inputs.astype(jnp.float32),
                 ((0, 0), (0, 0), (0, F_PAD - f_in))).astype(jnp.bfloat16)

    L = len(kparams["sage"])
    m = kparams["mlp"]
    args = [adj_bf, h0, inv_deg]
    for w_cat, b in kparams["sage"]:
        args.extend([w_cat, b])
    args.extend([m["w1"], m["scale"], m["shift"], m["w2"], m["b2"]])

    # Per-graph blocks for adj / h0 / inv_deg / out; constant index_maps for weights.
    in_specs = [
        pl.BlockSpec((None, N, N), lambda b: (b, 0, 0)),
        pl.BlockSpec((None, N, F_PAD), lambda b: (b, 0, 0)),
        pl.BlockSpec((None, N, 1), lambda b: (b, 0, 0)),
    ]
    for w_cat, bias in kparams["sage"]:
        in_specs.append(pl.BlockSpec(w_cat.shape, lambda b: (0, 0)))
        in_specs.append(pl.BlockSpec(bias.shape, lambda b: (0, 0)))
    for name in ("w1", "scale", "shift", "w2", "b2"):
        in_specs.append(pl.BlockSpec(m[name].shape, lambda b: (0, 0)))

    out_pad = pl.pallas_call(
        make_fused_kernel(L),
        out_shape=jax.ShapeDtypeStruct((B, N, F_PAD), jnp.float32),
        grid_spec=pltpu.PrefetchScalarGridSpec(
            num_scalar_prefetch=0,
            grid=(B,),
            in_specs=in_specs,
            out_specs=pl.BlockSpec((None, N, F_PAD), lambda b: (b, 0, 0)),
            scratch_shapes=[pltpu.VMEM((N, 2 * F_PAD), jnp.bfloat16)],
        ),
        compiler_params=pltpu.CompilerParams(
            dimension_semantics=("parallel",),
            # Explicit scoped-VMEM limit; re-derive (and switch adj to row-slab
            # BlockSpecs) before growing N past a few thousand nodes.
            vmem_limit_bytes=48 * 1024 * 1024,
        ),
    )(*args)
    return out_pad[:, :, :kparams["out_dim"]]


def sage_forward(adj, inputs, kparams):
    """Single-graph convenience wrapper (the PyTorch module's forward signature)."""
    return sage_forward_batched(adj[None], inputs[None], kparams)[0]


# ---------------------------------------------------------------------------
# Parameter setup: raw (PyTorch-like) params -> kernel-ready padded/folded params
# ---------------------------------------------------------------------------

def _pad2(x, rows, cols):
    return jnp.pad(x, ((0, rows - x.shape[0]), (0, cols - x.shape[1])))


def prepare_params(params, out_dim):
    """Pad feature dims to 128 lanes, stack [W_self; W_neigh], fold bias+BN shift."""
    kp = {"sage": [], "out_dim": out_dim}
    for layer in params["sage_layers"]:
        w_cat = jnp.concatenate(
            [_pad2(layer["w_self"], F_PAD, F_PAD),
             _pad2(layer["w_neigh"], F_PAD, F_PAD)], axis=0).astype(jnp.bfloat16)
        kp["sage"].append((w_cat, _pad2(layer["b"], 1, F_PAD)))

    m = params["mlp"]
    eps = 1e-5
    scale = m["gamma"] / jnp.sqrt(m["running_var"] + eps)
    shift = m["beta"] - m["running_mean"] * scale
    kp["mlp"] = {
        # W1 kept un-scaled (bf16-safe); BN scale stays a separate f32 vector.
        "w1": _pad2(m["w1"], F_PAD, F_PAD).astype(jnp.bfloat16),
        "scale": _pad2(scale[None, :], 1, F_PAD),
        # Linear-1 bias + BN shift folded into one f32 add.
        "shift": _pad2((m["b1"][0] * scale + shift)[None, :], 1, F_PAD),
        "w2": _pad2(m["w2"], F_PAD, F_PAD).astype(jnp.bfloat16),
        "b2": _pad2(m["b2"], 1, F_PAD),
    }
    return kp


def init_params(key, in_feats, hid_feats, out_feats, num_hidden_layers,
                mlp_input_dim, mlp_hidden_dim, mlp_output_dim):
    keys = jax.random.split(key, num_hidden_layers + 1)
    sage_layers = []
    for i in range(1, num_hidden_layers + 1):
        fin = in_feats if i == 1 else hid_feats
        fout = hid_feats if i < num_hidden_layers else out_feats
        kw = jax.random.split(keys[i - 1], 3)
        sage_layers.append({
            "w_self": 0.1 * jax.random.normal(kw[0], (fin, fout), jnp.float32),
            "w_neigh": 0.1 * jax.random.normal(kw[1], (fin, fout), jnp.float32),
            "b": 0.1 * jax.random.normal(kw[2], (1, fout), jnp.float32),
        })
    km = jax.random.split(keys[-1], 4)
    mlp = {
        "w1": 0.1 * jax.random.normal(km[0], (mlp_input_dim, mlp_hidden_dim), jnp.float32),
        "b1": 0.1 * jax.random.normal(km[1], (1, mlp_hidden_dim), jnp.float32),
        "gamma": jnp.ones((mlp_hidden_dim,), jnp.float32),
        "beta": jnp.zeros((mlp_hidden_dim,), jnp.float32),
        "running_mean": jnp.zeros((mlp_hidden_dim,), jnp.float32),
        "running_var": jnp.ones((mlp_hidden_dim,), jnp.float32),
        "w2": 0.1 * jax.random.normal(km[2], (mlp_hidden_dim, mlp_output_dim), jnp.float32),
        "b2": 0.1 * jax.random.normal(km[3], (1, mlp_output_dim), jnp.float32),
    }
    return {"sage_layers": sage_layers, "mlp": mlp}


# ---------------------------------------------------------------------------
# Pure-JAX f32 reference (mirrors the PyTorch module in eval mode)
# ---------------------------------------------------------------------------

def sage_forward_ref(adj, inputs, params):
    deg = jnp.sum(adj, axis=1, keepdims=True)
    adj_norm = adj * jnp.where(deg > 0, 1.0 / jnp.maximum(deg, 1.0), 0.0)
    h = inputs
    for layer in params["sage_layers"]:
        h_neigh = adj_norm @ h
        h = jnp.maximum(h @ layer["w_self"] + h_neigh @ layer["w_neigh"] + layer["b"], 0.0)
    m = params["mlp"]
    eps = 1e-5
    scale = m["gamma"] / jnp.sqrt(m["running_var"] + eps)
    shift = m["beta"] - m["running_mean"] * scale
    h = jnp.maximum((h @ m["w1"] + m["b1"]) * scale + shift, 0.0)
    return h @ m["w2"] + m["b2"]


if __name__ == "__main__":
    # Module hyperparameters (small, consistent with the forward pass):
    B, N = 2, 128                 # batch of graphs, nodes per graph
    in_feats, hid_feats, out_feats = 32, 32, 32
    num_hidden_layers = 2
    mlp_input_dim, mlp_hidden_dim, mlp_output_dim = out_feats, 32, 16
    # mask_c = 0.0 -> do_mask = False (no gumbel-softmax mask branch)

    key = jax.random.PRNGKey(0)
    k_adj, k_feat, k_param = jax.random.split(key, 3)

    # Deterministic random graphs (dense adjacency, ~10% edge density, no self-loops).
    adj = jax.random.bernoulli(k_adj, 0.1, (B, N, N)).astype(jnp.float32)
    adj = adj * (1.0 - jnp.eye(N, dtype=jnp.float32))[None]

    inputs = jax.random.normal(k_feat, (B, N, in_feats), jnp.float32)

    params = init_params(k_param, in_feats, hid_feats, out_feats, num_hidden_layers,
                         mlp_input_dim, mlp_hidden_dim, mlp_output_dim)
    kparams = prepare_params(params, mlp_output_dim)

    out = sage_forward_batched(adj, inputs, kparams)
    out = jax.block_until_ready(out)
    assert out.shape == (B, N, mlp_output_dim), out.shape

    # Sanity-check each graph against the f32 reference (loose tol: bf16 MXU operands).
    for b in range(B):
        ref = sage_forward_ref(adj[b], inputs[b], params)
        max_err = float(jnp.max(jnp.abs(out[b] - ref)))
        assert max_err < 1e-1, f"graph {b}: max abs error {max_err}"

    print("KERNEL_OK")
</pallas_src>

<mosaic_0001>
module attributes {stable_mosaic.version = 11 : i64} {
  func.func @kernel(%arg0: i32, %arg1: memref<1x128x128xbf16, #tpu.memory_space<vmem>>, %arg2: memref<1x128x128xbf16, #tpu.memory_space<vmem>>, %arg3: memref<1x128x1xf32, #tpu.memory_space<vmem>>, %arg4: memref<256x128xbf16, #tpu.memory_space<vmem>>, %arg5: memref<1x128xf32, #tpu.memory_space<vmem>>, %arg6: memref<256x128xbf16, #tpu.memory_space<vmem>>, %arg7: memref<1x128xf32, #tpu.memory_space<vmem>>, %arg8: memref<128x128xbf16, #tpu.memory_space<vmem>>, %arg9: memref<1x128xf32, #tpu.memory_space<vmem>>, %arg10: memref<1x128xf32, #tpu.memory_space<vmem>>, %arg11: memref<128x128xbf16, #tpu.memory_space<vmem>>, %arg12: memref<1x128xf32, #tpu.memory_space<vmem>>, %arg13: memref<1x128x128xf32, #tpu.memory_space<vmem>>, %arg14: memref<128x256xbf16, #tpu.memory_space<vmem>>) attributes {dimension_semantics = [#tpu.dimension_semantics<parallel>], iteration_bounds = array<i64: 2>, scalar_prefetch = 0 : i64, scratch_operands = 1 : i64, tpu.core_type = #tpu.core_type<tc>, window_params = [{transform_indices = @transform_0, window_bounds = array<i64: 1, 128, 128>}, {transform_indices = @transform_1, window_bounds = array<i64: 1, 128, 128>}, {transform_indices = @transform_2, window_bounds = array<i64: 1, 128, 1>}, {pipeline_mode = #tpu.pipeline_mode<synchronous>, transform_indices = @transform_3, window_bounds = array<i64: 256, 128>}, {pipeline_mode = #tpu.pipeline_mode<synchronous>, transform_indices = @transform_4, window_bounds = array<i64: 1, 128>}, {pipeline_mode = #tpu.pipeline_mode<synchronous>, transform_indices = @transform_5, window_bounds = array<i64: 256, 128>}, {pipeline_mode = #tpu.pipeline_mode<synchronous>, transform_indices = @transform_6, window_bounds = array<i64: 1, 128>}, {pipeline_mode = #tpu.pipeline_mode<synchronous>, transform_indices = @transform_7, window_bounds = array<i64: 128, 128>}, {pipeline_mode = #tpu.pipeline_mode<synchronous>, transform_indices = @transform_8, window_bounds = array<i64: 1, 128>}, {pipeline_mode = #tpu.pipeline_mode<synchronous>, transform_indices = @transform_9, window_bounds = array<i64: 1, 128>}, {pipeline_mode = #tpu.pipeline_mode<synchronous>, transform_indices = @transform_10, window_bounds = array<i64: 128, 128>}, {pipeline_mode = #tpu.pipeline_mode<synchronous>, transform_indices = @transform_11, window_bounds = array<i64: 1, 128>}, {transform_indices = @transform_12, window_bounds = array<i64: 1, 128, 128>}]} {
    %c0 = arith.constant 0 : index
    %c0_0 = arith.constant 0 : index
    %c0_1 = arith.constant 0 : index
    %0 = vector.load %arg1[%c0, %c0_0, %c0_1] : memref<1x128x128xbf16, #tpu.memory_space<vmem>>, vector<1x128x128xbf16>
    %1 = vector.shape_cast %0 : vector<1x128x128xbf16> to vector<128x128xbf16>
    %c0_2 = arith.constant 0 : index
    %c0_3 = arith.constant 0 : index
    %c0_4 = arith.constant 0 : index
    %2 = vector.load %arg3[%c0_2, %c0_3, %c0_4] : memref<1x128x1xf32, #tpu.memory_space<vmem>>, vector<1x128x1xf32>
    %3 = vector.shape_cast %2 : vector<1x128x1xf32> to vector<128x1xf32>
    %c0_5 = arith.constant 0 : index
    %c0_6 = arith.constant 0 : index
    %c0_7 = arith.constant 0 : index
    %4 = vector.load %arg2[%c0_5, %c0_6, %c0_7] : memref<1x128x128xbf16, #tpu.memory_space<vmem>>, vector<1x128x128xbf16>
    %5 = vector.shape_cast %4 : vector<1x128x128xbf16> to vector<128x128xbf16>
    %cst = arith.constant dense<0.000000e+00> : vector<128x128xf32>
    %6 = tpu.matmul %1, %5, %cst {dimension_numbers = #tpu.dot_dimension_numbers<[1], [0], [0], [1], [0, 0, 1, 1], [], []>} : vector<128x128xbf16>, vector<128x128xbf16>, vector<128x128xf32> -> vector<128x128xf32>
    %7 = vector.broadcast %3 : vector<128x1xf32> to vector<128x128xf32>
    %8 = arith.mulf %6, %7 : vector<128x128xf32>
    %c0_8 = arith.constant 0 : index
    %c0_9 = arith.constant 0 : index
    %9 = vector.load %arg14[%c0_8, %c0_9] : memref<128x256xbf16, #tpu.memory_space<vmem>>, vector<128x128xbf16>
    tpu.vector_store %arg14[%c0_8, %c0_9], %5 {strides = array<i32>} : memref<128x256xbf16, #tpu.memory_space<vmem>>, vector<128x128xbf16>,
    %10 = arith.truncf %8 : vector<128x128xf32> to vector<128x128xbf16>
    %c0_10 = arith.constant 0 : index
    %c128 = arith.constant 128 : index
    %11 = vector.load %arg14[%c0_10, %c128] : memref<128x256xbf16, #tpu.memory_space<vmem>>, vector<128x128xbf16>
    tpu.vector_store %arg14[%c0_10, %c128], %10 {strides = array<i32>} : memref<128x256xbf16, #tpu.memory_space<vmem>>, vector<128x128xbf16>,
    %c0_11 = arith.constant 0 : index
    %c0_12 = arith.constant 0 : index
    %12 = vector.load %arg14[%c0_11, %c0_12] : memref<128x256xbf16, #tpu.memory_space<vmem>>, vector<128x256xbf16>
    %c0_13 = arith.constant 0 : index
    %c0_14 = arith.constant 0 : index
    %13 = vector.load %arg4[%c0_13, %c0_14] : memref<256x128xbf16, #tpu.memory_space<vmem>>, vector<256x128xbf16>
    %cst_15 = arith.constant dense<0.000000e+00> : vector<128x128xf32>
    %14 = tpu.matmul %12, %13, %cst_15 {dimension_numbers = #tpu.dot_dimension_numbers<[1], [0], [0], [1], [0, 0, 1, 1], [], []>} : vector<128x256xbf16>, vector<256x128xbf16>, vector<128x128xf32> -> vector<128x128xf32>
    %c0_16 = arith.constant 0 : index
    %c0_17 = arith.constant 0 : index
    %15 = vector.load %arg5[%c0_16, %c0_17] : memref<1x128xf32, #tpu.memory_space<vmem>>, vector<1x128xf32>
    %16 = vector.broadcast %15 : vector<1x128xf32> to vector<128x128xf32>
    %17 = arith.addf %14, %16 : vector<128x128xf32>
    %cst_18 = arith.constant 0.000000e+00 : f32
    %18 = vector.broadcast %cst_18 : f32 to vector<128x128xf32>
    %19 = arith.maximumf %17, %18 : vector<128x128xf32>
    %20 = arith.truncf %19 : vector<128x128xf32> to vector<128x128xbf16>
    %cst_19 = arith.constant dense<0.000000e+00> : vector<128x128xf32>
    %21 = tpu.matmul %1, %20, %cst_19 {dimension_numbers = #tpu.dot_dimension_numbers<[1], [0], [0], [1], [0, 0, 1, 1], [], []>} : vector<128x128xbf16>, vector<128x128xbf16>, vector<128x128xf32> -> vector<128x128xf32>
    %22 = vector.broadcast %3 : vector<128x1xf32> to vector<128x128xf32>
    %23 = arith.mulf %21, %22 : vector<128x128xf32>
    %c0_20 = arith.constant 0 : index
    %c0_21 = arith.constant 0 : index
    %24 = vector.load %arg14[%c0_20, %c0_21] : memref<128x256xbf16, #tpu.memory_space<vmem>>, vector<128x128xbf16>
    tpu.vector_store %arg14[%c0_20, %c0_21], %20 {strides = array<i32>} : memref<128x256xbf16, #tpu.memory_space<vmem>>, vector<128x128xbf16>,
    %25 = arith.truncf %23 : vector<128x128xf32> to vector<128x128xbf16>
    %c0_22 = arith.constant 0 : index
    %c128_23 = arith.constant 128 : index
    %26 = vector.load %arg14[%c0_22, %c128_23] : memref<128x256xbf16, #tpu.memory_space<vmem>>, vector<128x128xbf16>
    tpu.vector_store %arg14[%c0_22, %c128_23], %25 {strides = array<i32>} : memref<128x256xbf16, #tpu.memory_space<vmem>>, vector<128x128xbf16>,
    %c0_24 = arith.constant 0 : index
    %c0_25 = arith.constant 0 : index
    %27 = vector.load %arg14[%c0_24, %c0_25] : memref<128x256xbf16, #tpu.memory_space<vmem>>, vector<128x256xbf16>
    %c0_26 = arith.constant 0 : index
    %c0_27 = arith.constant 0 : index
    %28 = vector.load %arg6[%c0_26, %c0_27] : memref<256x128xbf16, #tpu.memory_space<vmem>>, vector<256x128xbf16>
    %cst_28 = arith.constant dense<0.000000e+00> : vector<128x128xf32>
    %29 = tpu.matmul %27, %28, %cst_28 {dimension_numbers = #tpu.dot_dimension_numbers<[1], [0], [0], [1], [0, 0, 1, 1], [], []>} : vector<128x256xbf16>, vector<256x128xbf16>, vector<128x128xf32> -> vector<128x128xf32>
    %c0_29 = arith.constant 0 : index
    %c0_30 = arith.constant 0 : index
    %30 = vector.load %arg7[%c0_29, %c0_30] : memref<1x128xf32, #tpu.memory_space<vmem>>, vector<1x128xf32>
    %31 = vector.broadcast %30 : vector<1x128xf32> to vector<128x128xf32>
    %32 = arith.addf %29, %31 : vector<128x128xf32>
    %cst_31 = arith.constant 0.000000e+00 : f32
    %33 = vector.broadcast %cst_31 : f32 to vector<128x128xf32>
    %34 = arith.maximumf %32, %33 : vector<128x128xf32>
    %35 = arith.truncf %34 : vector<128x128xf32> to vector<128x128xbf16>
    %c0_32 = arith.constant 0 : index
    %c0_33 = arith.constant 0 : index
    %36 = vector.load %arg8[%c0_32, %c0_33] : memref<128x128xbf16, #tpu.memory_space<vmem>>, vector<128x128xbf16>
    %cst_34 = arith.constant dense<0.000000e+00> : vector<128x128xf32>
    %37 = tpu.matmul %35, %36, %cst_34 {dimension_numbers = #tpu.dot_dimension_numbers<[1], [0], [0], [1], [0, 0, 1, 1], [], []>} : vector<128x128xbf16>, vector<128x128xbf16>, vector<128x128xf32> -> vector<128x128xf32>
    %c0_35 = arith.constant 0 : index
    %c0_36 = arith.constant 0 : index
    %38 = vector.load %arg9[%c0_35, %c0_36] : memref<1x128xf32, #tpu.memory_space<vmem>>, vector<1x128xf32>
    %39 = vector.broadcast %38 : vector<1x128xf32> to vector<128x128xf32>
    %40 = arith.mulf %37, %39 : vector<128x128xf32>
    %c0_37 = arith.constant 0 : index
    %c0_38 = arith.constant 0 : index
    %41 = vector.load %arg10[%c0_37, %c0_38] : memref<1x128xf32, #tpu.memory_space<vmem>>, vector<1x128xf32>
    %42 = vector.broadcast %41 : vector<1x128xf32> to vector<128x128xf32>
    %43 = arith.addf %40, %42 : vector<128x128xf32>
    %cst_39 = arith.constant 0.000000e+00 : f32
    %44 = vector.broadcast %cst_39 : f32 to vector<128x128xf32>
    %45 = arith.maximumf %43, %44 : vector<128x128xf32>
    %46 = arith.truncf %45 : vector<128x128xf32> to vector<128x128xbf16>
    %c0_40 = arith.constant 0 : index
    %c0_41 = arith.constant 0 : index
    %47 = vector.load %arg11[%c0_40, %c0_41] : memref<128x128xbf16, #tpu.memory_space<vmem>>, vector<128x128xbf16>
    %cst_42 = arith.constant dense<0.000000e+00> : vector<128x128xf32>
    %48 = tpu.matmul %46, %47, %cst_42 {dimension_numbers = #tpu.dot_dimension_numbers<[1], [0], [0], [1], [0, 0, 1, 1], [], []>} : vector<128x128xbf16>, vector<128x128xbf16>, vector<128x128xf32> -> vector<128x128xf32>
    %c0_43 = arith.constant 0 : index
    %c0_44 = arith.constant 0 : index
    %49 = vector.load %arg12[%c0_43, %c0_44] : memref<1x128xf32, #tpu.memory_space<vmem>>, vector<1x128xf32>
    %50 = vector.broadcast %49 : vector<1x128xf32> to vector<128x128xf32>
    %51 = arith.addf %48, %50 : vector<128x128xf32>
    %c0_45 = arith.constant 0 : index
    %c0_46 = arith.constant 0 : index
    %c0_47 = arith.constant 0 : index
    %52 = vector.load %arg13[%c0_45, %c0_46, %c0_47] : memref<1x128x128xf32, #tpu.memory_space<vmem>>, vector<1x128x128xf32>
    %53 = vector.shape_cast %52 : vector<1x128x128xf32> to vector<128x128xf32>
    %54 = vector.shape_cast %51 : vector<128x128xf32> to vector<1x128x128xf32>
    tpu.vector_store %arg13[%c0_45, %c0_46, %c0_47], %54 {strides = array<i32>} : memref<1x128x128xf32, #tpu.memory_space<vmem>>, vector<1x128x128xf32>,
    return
  }
  func.func @transform_0(%arg0: i32) -> (i32, i32, i32) {
    %c0_i32 = arith.constant 0 : i32
    %c0_i32_0 = arith.constant 0 : i32
    %c0_i32_1 = arith.constant 0 : i32
    return %arg0, %c0_i32, %c0_i32_0 : i32, i32, i32
  }
  func.func @transform_1(%arg0: i32) -> (i32, i32, i32) {
    %c0_i32 = arith.constant 0 : i32
    %c0_i32_0 = arith.constant 0 : i32
    %c0_i32_1 = arith.constant 0 : i32
    return %arg0, %c0_i32, %c0_i32_0 : i32, i32, i32
  }
  func.func @transform_2(%arg0: i32) -> (i32, i32, i32) {
    %c0_i32 = arith.constant 0 : i32
    %c0_i32_0 = arith.constant 0 : i32
    %c0_i32_1 = arith.constant 0 : i32
    return %arg0, %c0_i32, %c0_i32_0 : i32, i32, i32
  }
  func.func @transform_3(%arg0: i32) -> (i32, i32) {
    %c0_i32 = arith.constant 0 : i32
    %c0_i32_0 = arith.constant 0 : i32
    %c0_i32_1 = arith.constant 0 : i32
    return %c0_i32, %c0_i32_0 : i32, i32
  }
  func.func @transform_4(%arg0: i32) -> (i32, i32) {
    %c0_i32 = arith.constant 0 : i32
    %c0_i32_0 = arith.constant 0 : i32
    %c0_i32_1 = arith.constant 0 : i32
    return %c0_i32, %c0_i32_0 : i32, i32
  }
  func.func @transform_5(%arg0: i32) -> (i32, i32) {
    %c0_i32 = arith.constant 0 : i32
    %c0_i32_0 = arith.constant 0 : i32
    %c0_i32_1 = arith.constant 0 : i32
    return %c0_i32, %c0_i32_0 : i32, i32
  }
  func.func @transform_6(%arg0: i32) -> (i32, i32) {
    %c0_i32 = arith.constant 0 : i32
    %c0_i32_0 = arith.constant 0 : i32
    %c0_i32_1 = arith.constant 0 : i32
    return %c0_i32, %c0_i32_0 : i32, i32
  }
  func.func @transform_7(%arg0: i32) -> (i32, i32) {
    %c0_i32 = arith.constant 0 : i32
    %c0_i32_0 = arith.constant 0 : i32
    %c0_i32_1 = arith.constant 0 : i32
    return %c0_i32, %c0_i32_0 : i32, i32
  }
  func.func @transform_8(%arg0: i32) -> (i32, i32) {
    %c0_i32 = arith.constant 0 : i32
    %c0_i32_0 = arith.constant 0 : i32
    %c0_i32_1 = arith.constant 0 : i32
    return %c0_i32, %c0_i32_0 : i32, i32
  }
  func.func @transform_9(%arg0: i32) -> (i32, i32) {
    %c0_i32 = arith.constant 0 : i32
    %c0_i32_0 = arith.constant 0 : i32
    %c0_i32_1 = arith.constant 0 : i32
    return %c0_i32, %c0_i32_0 : i32, i32
  }
  func.func @transform_10(%arg0: i32) -> (i32, i32) {
    %c0_i32 = arith.constant 0 : i32
    %c0_i32_0 = arith.constant 0 : i32
    %c0_i32_1 = arith.constant 0 : i32
    return %c0_i32, %c0_i32_0 : i32, i32
  }
  func.func @transform_11(%arg0: i32) -> (i32, i32) {
    %c0_i32 = arith.constant 0 : i32
    %c0_i32_0 = arith.constant 0 : i32
    %c0_i32_1 = arith.constant 0 : i32
    return %c0_i32, %c0_i32_0 : i32, i32
  }
  func.func @transform_12(%arg0: i32) -> (i32, i32, i32) {
    %c0_i32 = arith.constant 0 : i32
    %c0_i32_0 = arith.constant 0 : i32
    %c0_i32_1 = arith.constant 0 : i32
    return %arg0, %c0_i32, %c0_i32_0 : i32, i32, i32
  }
}

</mosaic_0001>

<bundles_post_ra>
// kernel: tpu_custom_call.1
= control target key start
LH: loop header
LB: loop body
LE: loop exit
PB: predicated region body
PF: predicated region fallthrough
CT: control target
= control target key end

     0   :  { %s3479_s0 = inlined_call_operand.vmem [shape: bf16[2,128,128], index: 0, kind: input, shape index: {}]   ;;  %s3480_s1 = inlined_call_operand.vmem [shape: bf16[2,128,128], index: 1, kind: input, shape index: {}]   ;;  %s3481_s2 = inlined_call_operand.vmem [shape: f32[2,128,1], index: 2, kind: input, shape index: {}]   ;;  %s3482_s3 = inlined_call_operand.hbm [shape: bf16[256,128], index: 3, kind: input, shape index: {}]   ;;  %s3483_s4 = inlined_call_operand.vmem [shape: f32[1,128], index: 4, kind: input, shape index: {}]   ;;  %s3484_s5 = inlined_call_operand.hbm [shape: bf16[256,128], index: 5, kind: input, shape index: {}]   ;;  %s3485_s6 = inlined_call_operand.vmem [shape: f32[1,128], index: 6, kind: input, shape index: {}]   ;;  %s3486_s7 = inlined_call_operand.hbm [shape: bf16[128,128], index: 7, kind: input, shape index: {}]   ;;  %s3487_s8 = inlined_call_operand.vmem [shape: f32[1,128], index: 8, kind: input, shape index: {}]   ;;  %s3488_s9 = inlined_call_operand.vmem [shape: f32[1,128], index: 9, kind: input, shape index: {}]   ;;  %s3489_s10 = inlined_call_operand.hbm [shape: bf16[128,128], index: 10, kind: input, shape index: {}]   ;;  %s3490_s11 = inlined_call_operand.vmem [shape: f32[1,128], index: 11, kind: input, shape index: {}]   ;;  %s3491_s12 = inlined_call_operand.hbm [shape: f32[2,128,128], index: 12, kind: output, shape index: {}]  }
   0x1   :  { %3498 = sst [smem:[#allocation22_spill]] %s3482_s3 }
   0x2   :  { %3499 = sst [smem:[#allocation23_spill]] %s3484_s5 }
   0x3   :  { %17 = vsyncpa [#allocation4], 0 }
   0x4   :  { %18 = vsyncpa [#allocation7], 0 }
   0x5   :  { %19 = vsyncpa [#allocation10], 0 }
   0x6   :  { %20 = vsyncpa [#allocation5], 0 }
   0x7   :  { %22 = vsyncpa [#allocation5 + $0x1], 0  ;;  %s3049_s21 = smov 0   ;;  %s3051_s22 = smov 0  }
   0x8   :  { %s3053_s23 = smov 0   ;;  %s3055_s24 = smov 0  }
   0x9 LB: > { %3500 = sst [smem:[#allocation16_spill]] %s2961_s21  ;;  %s3070_s25 = sadd.s32 4294967295, %s2973_s24   ;;  %s2973_s24 = sphi %s3055_s24, %s3515_s24   ;;  %s2969_s23 = sphi %s3053_s23, %s3517_s23   ;;  %s2965_s22 = sphi %s3051_s22, %s3519_s22   ;;  %s2961_s21 = sphi %s3049_s21, %s3518_s21  }
   0xa   : > { %3501 = sst [smem:[#allocation17_spill]] %s2969_s23  ;;  %s2178_s26 = sadd.s32 4294967294, %s2973_s24  }
   0xb   : > { %3502 = sst [smem:[#allocation18_spill]] %s2973_s24  ;;  %s3074_s27 = sadd.s32 1, %s2973_s24  }
   0xc   : > { %3503 = sst [smem:[#allocation19_spill]] %s3074_s27  ;;  %s302_s28 = sadd.s32 1, %s2969_s23 }
   0xd   : > { %s299_s29 = ssub.s32 %s2973_s24, %s3074_s27  ;;  %p312_p0 = scmp.ne.s32.totalorder %s2969_s23, %s2965_s22 }
   0xe   : > { %p300_p1 = scmp.eq.s32.totalorder %s299_s29, 0  ;;  %p313_p2 = scmp.eq.s32.totalorder %s3070_s25, 1 }
   0xf   : > { %p318_p3 = scmp.ne.s32.totalorder %s2965_s22, %s2961_s21  ;;  %p319_p4 = scmp.eq.s32.totalorder %s2178_s26, 1 }
  0x10   : > { %s3085_s30 = scalar_select %p300_p1, %s2969_s23, %s302_s28  }
  0x11   : > { %p3087_p5 = por %p313_p2, %p312_p0  ;;  %p3091_p6 = por %p319_p4, %p318_p3 }
  0x12   : > { %3504 = sst [smem:[#allocation20_spill]] %s3085_s30  ;;  %p2179_p7 = scmp.ge.s32.totalorder %s2973_s24, 1 }
  0x13   : > { %s3506_s14 = scalar_select %p3091_p6, 1, 0 }
  0x14   : > { %p326_p8 = scmp.lt.s32.totalorder %s2973_s24, 3  ;;  %p2721_p9 = scmp.eq.s32.totalorder %s3070_s25, 0 }
  0x15   : > { %3507 = sst [smem:[#allocation21_spill]] %s3506_s14  ;;  %s2975_s29 = smov [#allocation6]  }
  0x16   : > { %p3098_p10 = pnand %p2179_p7, %p326_p8  ;;  %s3509_s5 = sld [smem:[#allocation23_spill]] }
  0x17   : > { %s3510_s3 = sld [smem:[#allocation22_spill]]  ;;  %s356_s30 = sshll.u32 %s2975_s29, 4  ;;  %s357_s30 = int_to_ptr.vmem [resolvable:$true] %s356_s30 }
  0x18   : > { %p2704_p11 = pneg %p3098_p10  ;;  %s2976_s16 = smov 64  }
  0x19   : > { %s2977_s17 = smov 4   ;;  %s371_s23 = sshll.u32 %s3486_s7, 4  ;;  %s372_s23 = int_to_ptr.hbm [resolvable:$true] %s371_s23 }
  0x1a   : > { %p3112_p12 = pnand %p2721_p9, %p2704_p11  ;;  %s391_s14 = sshll.u32 %s3489_s10, 4  ;;  %s392_s14 = int_to_ptr.hbm [resolvable:$true] %s391_s14 }
  0x1b   : > { %s2979_s21 = smov [#allocation8]  }
  0x1c   : > { %s354_s18 = sshll.u32 %s3509_s5, 4  ;;  %s2978_s5 = smov [#allocation3]   ;;  %s355_s18 = int_to_ptr.hbm [resolvable:$true] %s354_s18 }
  0x1d   : > { %s337_s26 = sshll.u32 %s3510_s3, 4  ;;  %s339_s19 = sshll.u32 %s2978_s5, 4  ;;  %s338_s26 = int_to_ptr.hbm [resolvable:$true] %s337_s26  ;;  %s340_s19 = int_to_ptr.vmem [resolvable:$true] %s339_s19 }
  0x1e   : > { %2710 = dma.hbm_to_vmem [thread:$0]  (!%p3112_p12), %s355_s18, 2048, %s357_s30, [#allocation7], %s2976_s16, %s2976_s16, %s2977_s17  }
  0x1f   : > { %2707 = dma.hbm_to_vmem [thread:$0]  (!%p3112_p12), %s338_s26, 2048, %s340_s19, [#allocation4], %s2976_s16, %s2976_s16, %s2977_s17  }
  0x20   : > { %s373_s24 = sshll.u32 %s2979_s21, 4  ;;  %s2980_s30 = smov [#allocation9]   ;;  %s374_s24 = int_to_ptr.vmem [resolvable:$true] %s373_s24 }
  0x21   : > { %2713 = dma.hbm_to_vmem [thread:$0]  (!%p3112_p12), %s372_s23, 1024, %s374_s24, [#allocation7], %s2976_s16, %s2976_s16, %s2977_s17  }
  0x22   : > { %s393_s5 = sshll.u32 %s2980_s30, 4  ;;  %436 = sbr.rel (%p3098_p10) target bundleno = 1223 (0x4c7), region = 68  ;;  %s394_s5 = int_to_ptr.vmem [resolvable:$true] %s393_s5 }
  0x23   : > { %2716 = dma.hbm_to_vmem [thread:$0]  (!%p3112_p12), %s392_s14, 1024, %s394_s5, [#allocation10], %s2976_s16, %s2976_s16, %s2977_s17  }
  0x27   : > { %2944 = dma.done.wait (%p2721_p9), [#allocation4], 2048  }
  0x28   : > { %2946 = vsyncadd (%p2721_p9), [#allocation4], 4294965248 }
  0x29   : > { %2948 = dma.done.wait (%p2721_p9), [#allocation7], 3072  }
  0x2a   : > { %2950 = vsyncadd (%p2721_p9), [#allocation7], 4294964224 }
  0x2b   : > { %2952 = dma.done.wait (%p2721_p9), [#allocation10], 1024  }
  0x2c   : > { %2954 = vsyncadd (%p2721_p9), [#allocation10], 4294966272  ;;  %p504_p13 = scmp.lt.s32.totalorder %s3070_s25, 1  ;;  %v2981_v0 = vmov 0   ;;  %v2628_v31 = vld [vmem:[#allocation3 + $0x38] sm:$0xff]  ;;  %v2627_v33 = vld [vmem:[#allocation3 + $0x30] sm:$0xff] }
  0x2d   : > { %2771 = vset.pattern.permute.xlu0 %v2981_v0  ;;  %2772 = vset.pattern.permute.xlu1 %v2981_v0  ;;  %v2636_v32 = vld [vmem:[#allocation3 + $0x78] sm:$0xff]  ;;  %v2635_v34 = vld [vmem:[#allocation3 + $0x70] sm:$0xff]  ;;  %v2626_v35 = vld [vmem:[#allocation3 + $0x28] sm:$0xff]  ;;  %s501_s24 = sand.u32 1, %s2965_s22  }
  0x2e   : > { %s3146_s3 = scalar_select %p504_p13, %s3070_s25, 1  ;;  %2773 = vset.pattern.permute.xlu2 %v2981_v0  ;;  %1084 = vmatpush.bf16.msra.mxu1 %v2628_v31  ;;  %v2634_v36 = vld [vmem:[#allocation3 + $0x68] sm:$0xff]  ;;  %v2625_v37 = vld [vmem:[#allocation3 + $0x20] sm:$0xff]  ;;  %v2624_v39 = vld [vmem:[#allocation3 + $0x18] sm:$0xff] }
  0x2f   : > { %1133 = vmatpush.bf16.msra.mxu2 %v2636_v32  ;;  %v2633_v40 = vld [vmem:[#allocation3 + $0x60] sm:$0xff]  ;;  %v2623_v41 = vld [vmem:[#allocation3 + $0x10] sm:$0xff]  ;;  %v2632_v42 = vld [vmem:[#allocation3 + $0x58] sm:$0xff]  ;;  %s2190_s27 = sshll.u32 %s501_s24, 7  ;;  %s2036_s29 = scalar_lea.sflag [#allocation5], %s501_s24 }
  0x30   : > { %s2586_s21 = sshll.u32 %s3146_s3, 6  ;;  %s2588_s23 = sshll.u32 %s3146_s3, 7  ;;  %v2622_v45 = vld [vmem:[#allocation3 + $0x8] sm:$0xff]  ;;  %v2631_v46 = vld [vmem:[#allocation3 + $0x50] sm:$0xff]  ;;  %v2621_v47 = vld [vmem:[#allocation3] sm:$0xff] }
  0x31   : > { %s3155_s14 = scalar_lea.vmem %s3480_s1, %s2586_s21  ;;  %s3160_s26 = scalar_lea.vmem %s3481_s2, %s2588_s23  ;;  %v2630_v48 = vld [vmem:[#allocation3 + $0x48] sm:$0xff]  ;;  %v2629_v53 = vld [vmem:[#allocation3 + $0x40] sm:$0xff] }
  0x32   : > { %v2604_v1 = vld [vmem:[%s3155_s14 + $0x38] sm:$0xff]  ;;  %v535_v2 = vld [vmem:[%s3160_s26] sm:$0xff]  ;;  %v2603_v3 = vld [vmem:[%s3155_s14 + $0x30] sm:$0xff]  ;;  %s3183_s17 = scalar_lea.vmem %s3479_s0, %s2586_s21  ;;  %1085 = vmatpush.bf16.msra.mxu1 %v2627_v33  ;;  %s3427_s18 = scalar_lea.vmem [#allocation11], %s2190_s27 }
  0x33   : > { %714 = vperm.xlu0 %2771, %v535_v2   ;;  %663 = vmatpush.bf16.msra.mxu0 %v2604_v1  ;;  %v537_v4 = vld [vmem:[%s3160_s26 + $0x10] sm:$0xff]  ;;  %v2602_v5 = vld [vmem:[%s3155_s14 + $0x28] sm:$0xff]  ;;  %v538_v7 = vld [vmem:[%s3160_s26 + $0x18] sm:$0xff]  ;;  %s2048_s19 = sshll.u32 %s3427_s18, 4  ;;  %s2919_s21 = scalar_lea.hbm %s3491_s12, 256  ;;  %s2049_s19 = int_to_ptr.vmem [resolvable:$true] %s2048_s19 }
  0x34   : > { %724 = vperm.xlu1 %2772, %v537_v4   ;;  %v536_v6 = vld [vmem:[%s3160_s26 + $0x8] sm:$0xff]  ;;  %v2601_v8 = vld [vmem:[%s3155_s14 + $0x20] sm:$0xff]  ;;  %v2600_v9 = vld [vmem:[%s3155_s14 + $0x18] sm:$0xff]  ;;  %1134 = vmatpush.bf16.msra.mxu2 %v2635_v34 }
  0x35   : > { %v541_v10 = vld [vmem:[%s3160_s26 + $0x30] sm:$0xff]  ;;  %v542_v11 = vld [vmem:[%s3160_s26 + $0x38] sm:$0xff]  ;;  %v2598_v13 = vld [vmem:[%s3155_s14 + $0x8] sm:$0xff] }
  0x36   : > { %v2599_v12 = vld [vmem:[%s3155_s14 + $0x10] sm:$0xff]  ;;  %v544_v14 = vld [vmem:[%s3160_s26 + $0x48] sm:$0xff]  ;;  %v2597_v16 = vld [vmem:[%s3155_s14] sm:$0xff]  ;;  %1086 = vmatpush.bf16.msra.mxu1 %v2626_v35 }
  0x37   : > { %664 = vmatpush.bf16.msra.mxu0 %v2603_v3  ;;  %v545_v15 = vld [vmem:[%s3160_s26 + $0x50] sm:$0xff]  ;;  %v3186_v17 = vld [vmem:[%s3183_s17] sm:$0xff]  ;;  %v548_v19 = vld [vmem:[%s3160_s26 + $0x68] sm:$0xff] }
  0x38   : > { %v547_v18 = vld [vmem:[%s3160_s26 + $0x60] sm:$0xff]  ;;  %v550_v21 = vld [vmem:[%s3160_s26 + $0x78] sm:$0xff]  ;;  %v540_v22 = vld [vmem:[%s3160_s26 + $0x28] sm:$0xff]  ;;  %1135 = vmatpush.bf16.msra.mxu2 %v2634_v36 }
  0x39   : > { %v539_v20 = vld [vmem:[%s3160_s26 + $0x20] sm:$0xff]  ;;  %v3195_v23 = vld [vmem:[%s3183_s17 + $0x8] sm:$0xff]  ;;  %v546_v25 = vld [vmem:[%s3160_s26 + $0x58] sm:$0xff] }
  0x3a   : > { %734 = vperm.xlu2 %2773, %v539_v20   ;;  %v543_v24 = vld [vmem:[%s3160_s26 + $0x40] sm:$0xff]  ;;  %v3201_v26 = vld [vmem:[%s3183_s17 + $0x10] sm:$0xff]  ;;  %v3206_v28 = vld [vmem:[%s3183_s17 + $0x18] sm:$0xff]  ;;  %1087 = vmatpush.bf16.msra.mxu1 %v2625_v37 }
  0x3b   : > { %719 = vperm.xlu0 %2771, %v536_v6   ;;  %665 = vmatpush.bf16.msra.mxu0 %v2602_v5  ;;  %v549_v27 = vld [vmem:[%s3160_s26 + $0x70] sm:$0xff]  ;;  %v3210_v29 = vld [vmem:[%s3183_s17 + $0x20] sm:$0xff]  ;;  %v3214_v30 = vld [vmem:[%s3183_s17 + $0x28] sm:$0xff]  ;;  %s2685_s26 = sshll.u32 %s3070_s25, 7 }
  0x3c   : > { %729 = vperm.xlu1 %2772, %v538_v7   ;;  %v3218_v38 = vld [vmem:[%s3183_s17 + $0x30] sm:$0xff]  ;;  %1136 = vmatpush.bf16.msra.mxu2 %v2633_v40  ;;  %v551_v43 = vld [vmem:[%s3155_s14] sm:$0xf]  ;;  %v552_v44 = vld [vmem:[%s3155_s14 + $0x4] sm:$0xf] }
  0x3d   : > { %808 = vst [vmem:[#allocation2] sm:$0xf] %v551_v43  ;;  %v3224_v49 = vld [vmem:[%s3183_s17 + $0x38] sm:$0xff]  ;;  %v553_v54 = vld [vmem:[%s3155_s14 + $0x8] sm:$0xf]  ;;  %s2047_s17 = scalar_lea.hbm %s3491_s12, %s2685_s26 }
  0x3e   : > { %1088 = vmatpush.bf16.msra.mxu1 %v2624_v39  ;;  %809 = vst [vmem:[#allocation2 + $0x8] sm:$0xf] %v552_v44  ;;  %v554_v55 = vld [vmem:[%s3155_s14 + $0xc] sm:$0xf]  ;;  %v555_v1 = vld [vmem:[%s3155_s14 + $0x10] sm:$0xf] }
  0x3f   : > { %666 = vmatpush.bf16.msra.mxu0 %v2601_v8  ;;  %810 = vst [vmem:[#allocation2 + $0x10] sm:$0xf] %v553_v54  ;;  %v556_v2 = vld [vmem:[%s3155_s14 + $0x14] sm:$0xf]  ;;  %v559_v40 = vld [vmem:[%s3155_s14 + $0x20] sm:$0xf] }
  0x40   : > { %1137 = vmatpush.bf16.msra.mxu2 %v2632_v42  ;;  %811 = vst [vmem:[#allocation2 + $0x18] sm:$0xf] %v554_v55  ;;  %s2050_s20 = sshll.u32 %s2047_s17, 4  ;;  %s2051_s20 = int_to_ptr.hbm [resolvable:$true] %s2050_s20 }
  0x41   : > { %812 = vst [vmem:[#allocation2 + $0x20] sm:$0xf] %v555_v1  ;;  %s2913_s30 = sshra.s32 %s2051_s20, 4  ;;  %s2914_s30 = int_to_ptr.hbm [resolvable:$true] %s2913_s30 }
  0x42   : > { %739 = vperm.xlu2 %2773, %v540_v22   ;;  %1089 = vmatpush.bf16.msra.mxu1 %v2623_v41  ;;  %813 = vst [vmem:[#allocation2 + $0x28] sm:$0xf] %v556_v2  ;;  %v560_v41 = vld [vmem:[%s3155_s14 + $0x24] sm:$0xf]  ;;  %s2915_s25 = scalar_lea.hbm %s2914_s30, 128  ;;  %p2920_p3 = scmp.lt.s32.totalorder %s2914_s30, %s3491_s12 }
  0x43   : > { %744 = vperm.xlu0 %2771, %v541_v10   ;;  %667 = vmatpush.bf16.msra.mxu0 %v2600_v9  ;;  %816 = vst [vmem:[#allocation2 + $0x40] sm:$0xf] %v559_v40  ;;  %p2916_p0 = scmp.ne.s32.totalorder %s2914_s30, %s2915_s25  ;;  %p2921_p4 = scmp.lt.s32.totalorder %s2919_s21, %s2915_s25 }
  0x44   : > { %749 = vperm.xlu1 %2772, %v542_v11   ;;  %1138 = vmatpush.bf16.msra.mxu2 %v2631_v46  ;;  %v2263_v50 = vld [vmem:[#allocation2] sm:$0xf]  ;;  %817 = vst [vmem:[#allocation2 + $0x48] sm:$0xf] %v560_v41 }
  0x45   : > { %v2606_v51 = vld [vmem:[#allocation2 + $0x4] sm:$0xf0]  ;;  %p2917_p1 = pnand %p2916_p0, %p3087_p5  ;;  %p2922_p7 = por %p2921_p4, %p2920_p3 }
  0x46   : > { %1090 = vmatpush.bf16.msra.mxu1 %v2622_v45  ;;  %v2264_v52 = vor.u32 %v2606_v51, %v2263_v50  ;;  %v2271_v58 = vld [vmem:[#allocation2 + $0x10] sm:$0xf] }
  0x47   : > { %668 = vmatpush.bf16.msra.mxu0 %v2599_v12  ;;  %v2608_v60 = vld [vmem:[#allocation2 + $0x14] sm:$0xf0]  ;;  %p2918_p2 = pneg %p2917_p1 }
  0x48   : > { %1139 = vmatpush.bf16.msra.mxu2 %v2630_v48  ;;  %v2272_v61 = vor.u32 %v2608_v60, %v2271_v58  ;;  %v2279_v7 = vld [vmem:[#allocation2 + $0x20] sm:$0xf]  ;;  %v561_v58 = vld [vmem:[%s3155_s14 + $0x28] sm:$0xf] }
  0x49   : > { %v2610_v9 = vld [vmem:[#allocation2 + $0x24] sm:$0xf0]  ;;  %818 = vst [vmem:[#allocation2 + $0x50] sm:$0xf] %v561_v58  ;;  %p2923_p8 = pnand %p2922_p7, %p2918_p2 }
  0x4a   : > { %754 = vperm.xlu2 %2773, %v543_v24   ;;  %1091 = vmatpush.bf16.msra.mxu1 %v2621_v47  ;;  %v2280_v10 = vor.u32 %v2610_v9, %v2279_v7  ;;  %v2295_v46 = vld [vmem:[#allocation2 + $0x40] sm:$0xf] }
  0x4b   : > { %759 = vperm.xlu0 %2771, %v544_v14   ;;  %669 = vmatpush.bf16.msra.mxu0 %v2598_v13  ;;  %v2614_v48 = vld [vmem:[#allocation2 + $0x44] sm:$0xf0] }
  0x4c   : > { %764 = vperm.xlu1 %2772, %v545_v15   ;;  %1140 = vmatpush.bf16.msra.mxu2 %v2629_v53  ;;  %v2296_v50 = vor.u32 %v2614_v48, %v2295_v46 }
  0x4d   : > { %1092 = vmatmul.bf16.vlgmr.msra.gmra.mxu1 %v2264_v52 }
  0x4f   : > { %670 = vmatpush.bf16.msra.mxu0 %v2597_v16 }
  0x50   : > { %v2303_v1 = vld [vmem:[#allocation2 + $0x50] sm:$0xf] }
  0x52   : > { %671 = vmatmul.bf16.vlgmr.msra.gmra.mxu0 %v3186_v17  ;;  %769 = vperm.xlu2 %2773, %v546_v25  }
  0x53   : > { %774 = vperm.xlu0 %2771, %v547_v18   ;;  %v557_v18 = vld [vmem:[%s3155_s14 + $0x18] sm:$0xf] }
  0x54   : > { %779 = vperm.xlu1 %2772, %v548_v19   ;;  %v558_v19 = vld [vmem:[%s3155_s14 + $0x1c] sm:$0xf]  ;;  %814 = vst [vmem:[#allocation2 + $0x30] sm:$0xf] %v557_v18 }
  0x55   : > { %815 = vst [vmem:[#allocation2 + $0x38] sm:$0xf] %v558_v19 }
  0x5a   : > { %784 = vperm.xlu2 %2773, %v549_v27  }
  0x5b   : > { %789 = vperm.xlu0 %2771, %v550_v21   ;;  %v2287_v25 = vld [vmem:[#allocation2 + $0x30] sm:$0xf] }
  0x5c   : > { %v2612_v31 = vld [vmem:[#allocation2 + $0x34] sm:$0xf0] }
  0x5d   : > { %1097 = vmatmul.bf16.gmra.mxu1 %v2272_v61  ;;  %v2288_v32 = vor.u32 %v2612_v31, %v2287_v25 }
  0x62   : > { %676 = vmatmul.bf16.gmra.mxu0 %v3195_v23 }
  0x6d   : > { %1102 = vmatmul.bf16.gmra.mxu1 %v2280_v10 }
  0x72   : > { %681 = vmatmul.bf16.gmra.mxu0 %v3201_v26 }
  0x7d   : > { %1107 = vmatmul.bf16.gmra.mxu1 %v2288_v32 }
  0x82   : > { %686 = vmatmul.bf16.gmra.mxu0 %v3206_v28 }
  0x8d   : > { %1112 = vmatmul.bf16.gmra.mxu1 %v2296_v50 }
  0x92   : > { %691 = vmatmul.bf16.gmra.mxu0 %v3210_v29 }
  0x94   : > { %v3245_v22 = vpop.permute.xlu2 %734 }
  0x9c   : > { %v3248_v37 = vpop.permute.xlu2 %739 }
  0xa2   : > { %696 = vmatmul.bf16.gmra.mxu0 %v3214_v30 }
  0xa5   : > { %v3229_v56 = vpop.permute.xlu0 %714 }
  0xa6   : > { %v3237_v5 = vpop.permute.xlu1 %724 }
  0xad   : > { %v3232_v63 = vpop.permute.xlu0 %719 }
  0xae   : > { %v3240_v15 = vpop.permute.xlu1 %729 }
  0xb2   : > { %701 = vmatmul.bf16.gmra.mxu0 %v3218_v38 }
  0xb5   : > { %v3253_v44 = vpop.permute.xlu0 %744 }
  0xb6   : > { %v3256_v55 = vpop.permute.xlu1 %749 }
  0xbd   : > { %v3264_v10 = vpop.permute.xlu0 %759 }
  0xbe   : > { %v3269_v18 = vpop.permute.xlu1 %764 }
  0xc2   : > { %706 = vmatmul.bf16.gmra.mxu0 %v3224_v49 }
  0xcf   : > { %v672_v57 = vpop.f32.mrf.mxu0 }
  0xd0   : > { %v792_v59 = vmul.f32 %v3229_v56, %v672_v57 }
  0xd2   : > { %v824_v62 = vpack.c.bf16 %v792_v59, %v792_v59  ;;  %v562_v59 = vld [vmem:[%s3155_s14 + $0x2c] sm:$0xf] }
  0xd3   : > { %819 = vst [vmem:[#allocation2 + $0x58] sm:$0xf] %v562_v59 }
  0xd4   : > { %840 = vst [vmem:[#allocation2 + $0x4] sm:$0xf] %v824_v62  ;;  %v3261_v62 = vpop.permute.xlu2 %754 }
  0xd7   : > { %v674_v0 = vpop.f32.mrf.mxu0 }
  0xd8   : > { %v793_v3 = vmul.f32 %v3232_v63, %v674_v0 }
  0xda   : > { %v825_v4 = vpack.c.bf16 %v793_v3, %v793_v3  ;;  %v2616_v3 = vld [vmem:[#allocation2 + $0x54] sm:$0xf0] }
  0xdb   : > { %v2605_v12 = vld [vmem:[#allocation2 + $0x4] sm:$0xf] }
  0xdc   : > { %841 = vst [vmem:[#allocation2 + $0xc] sm:$0xf] %v825_v4  ;;  %v2304_v4 = vor.u32 %v2616_v3, %v2303_v1 }
  0xde   : > { %1117 = vmatmul.bf16.gmra.mxu1 %v2304_v4 }
  0xdf   : > { %v677_v6 = vpop.f32.mrf.mxu0 }
  0xe0   : > { %v794_v8 = vmul.f32 %v3237_v5, %v677_v6 }
  0xe2   : > { %v826_v11 = vpack.c.bf16 %v794_v8, %v794_v8 }
  0xe3   : > { %v2265_v13 = vld [vmem:[#allocation2 + $0x8] sm:$0xf0] }
  0xe4   : > { %842 = vst [vmem:[#allocation2 + $0x14] sm:$0xf] %v826_v11  ;;  %v2268_v14 = vor.u32 %v2605_v12, %v2265_v13  ;;  %v563_v12 = vld [vmem:[%s3155_s14 + $0x30] sm:$0xf]  ;;  %v564_v13 = vld [vmem:[%s3155_s14 + $0x34] sm:$0xf] }
  0xe5   : > { %820 = vst [vmem:[#allocation2 + $0x60] sm:$0xf] %v563_v12 }
  0xe6   : > { %1141 = vmatmul.bf16.vlgmr.msra.gmra.mxu2 %v2268_v14  ;;  %821 = vst [vmem:[#allocation2 + $0x68] sm:$0xf] %v564_v13  ;;  %v2658_v13 = vld [vmem:[#allocation6 + $0x28] sm:$0xff] }
  0xe7   : > { %v679_v16 = vpop.f32.mrf.mxu0 }
  0xe8   : > { %v795_v20 = vmul.f32 %v3240_v15, %v679_v16 }
  0xea   : > { %v827_v21 = vpack.c.bf16 %v795_v20, %v795_v20 }
  0xeb   : > { %v2607_v34 = vld [vmem:[#allocation2 + $0x14] sm:$0xf] }
  0xec   : > { %843 = vst [vmem:[#allocation2 + $0x1c] sm:$0xf] %v827_v21  ;;  %v2311_v20 = vld [vmem:[#allocation2 + $0x60] sm:$0xf] }
  0xef   : > { %v682_v24 = vpop.f32.mrf.mxu0 }
  0xf0   : > { %v796_v27 = vmul.f32 %v3245_v22, %v682_v24  ;;  %v2618_v24 = vld [vmem:[#allocation2 + $0x64] sm:$0xf0] }
  0xf1   : > { %v2312_v25 = vor.u32 %v2618_v24, %v2311_v20  ;;  %v2656_v20 = vld [vmem:[#allocation6 + $0x18] sm:$0xff] }
  0xf2   : > { %v828_v33 = vpack.c.bf16 %v796_v27, %v796_v27 }
  0xf3   : > { %v2273_v35 = vld [vmem:[#allocation2 + $0x18] sm:$0xf0]  ;;  %1122 = vmatmul.bf16.gmra.mxu1 %v2312_v25 }
  0xf4   : > { %844 = vst [vmem:[#allocation2 + $0x24] sm:$0xf] %v828_v33  ;;  %v2276_v36 = vor.u32 %v2607_v34, %v2273_v35  ;;  %v3272_v34 = vpop.permute.xlu2 %769 }
  0xf6   : > { %1146 = vmatmul.bf16.gmra.mxu2 %v2276_v36  ;;  %v565_v36 = vld [vmem:[%s3155_s14 + $0x38] sm:$0xf] }
  0xf7   : > { %v684_v39 = vpop.f32.mrf.mxu0  ;;  %822 = vst [vmem:[#allocation2 + $0x70] sm:$0xf] %v565_v36 }
  0xf8   : > { %v797_v42 = vmul.f32 %v3248_v37, %v684_v39  ;;  %v566_v39 = vld [vmem:[%s3155_s14 + $0x3c] sm:$0xf] }
  0xf9   : > { %823 = vst [vmem:[#allocation2 + $0x78] sm:$0xf] %v566_v39 }
  0xfa   : > { %v829_v43 = vpack.c.bf16 %v797_v42, %v797_v42  ;;  %v3277_v42 = vpop.permute.xlu0 %774 }
  0xfb   : > { %v2609_v52 = vld [vmem:[#allocation2 + $0x24] sm:$0xf] }
  0xfc   : > { %845 = vst [vmem:[#allocation2 + $0x2c] sm:$0xf] %v829_v43 }
  0xff   : > { %v687_v45 = vpop.f32.mrf.mxu0 }
 0x100   : > { %v798_v47 = vmul.f32 %v3253_v44, %v687_v45  ;;  %v2319_v45 = vld [vmem:[#allocation2 + $0x70] sm:$0xf] }
 0x102   : > { %v830_v51 = vpack.c.bf16 %v798_v47, %v798_v47  ;;  %v2620_v47 = vld [vmem:[#allocation2 + $0x74] sm:$0xf0] }
 0x103   : > { %v2281_v53 = vld [vmem:[#allocation2 + $0x28] sm:$0xf0]  ;;  %v2320_v48 = vor.u32 %v2620_v47, %v2319_v45 }
 0x104   : > { %846 = vst [vmem:[#allocation2 + $0x34] sm:$0xf] %v830_v51  ;;  %v2284_v54 = vor.u32 %v2609_v52, %v2281_v53 }
 0x105   : > { %1127 = vmatmul.bf16.gmra.mxu1 %v2320_v48 }
 0x106   : > { %1151 = vmatmul.bf16.gmra.mxu2 %v2284_v54  ;;  %v2660_v54 = vld [vmem:[#allocation6 + $0x38] sm:$0xff] }
 0x107   : > { %v689_v57 = vpop.f32.mrf.mxu0  ;;  %1603 = vmatpush.bf16.msrb.mxu0 %v2660_v54 }
 0x108   : > { %v799_v60 = vmul.f32 %v3256_v55, %v689_v57  ;;  %v3280_v57 = vpop.permute.xlu1 %779 }
 0x10a   : > { %v831_v61 = vpack.c.bf16 %v799_v60, %v799_v60  ;;  %v2659_v60 = vld [vmem:[#allocation6 + $0x30] sm:$0xff] }
 0x10b   : > { %v2611_v7 = vld [vmem:[#allocation2 + $0x34] sm:$0xf]  ;;  %1604 = vmatpush.bf16.msrb.mxu0 %v2659_v60 }
 0x10c   : > { %847 = vst [vmem:[#allocation2 + $0x3c] sm:$0xf] %v831_v61 }
 0x10f   : > { %v692_v0 = vpop.f32.mrf.mxu0  ;;  %1605 = vmatpush.bf16.msrb.mxu0 %v2658_v13 }
 0x110   : > { %v800_v2 = vmul.f32 %v3261_v62, %v692_v0  ;;  %v3283_v0 = vpop.permute.xlu2 %784 }
 0x112   : > { %v832_v6 = vpack.c.bf16 %v800_v2, %v800_v2 }
 0x113   : > { %v2289_v8 = vld [vmem:[#allocation2 + $0x38] sm:$0xf0] }
 0x114   : > { %848 = vst [vmem:[#allocation2 + $0x44] sm:$0xf] %v832_v6  ;;  %v2292_v9 = vor.u32 %v2611_v7, %v2289_v8  ;;  %v3286_v8 = vpop.permute.xlu0 %789 }
 0x116   : > { %1156 = vmatmul.bf16.gmra.mxu2 %v2292_v9 }
 0x117   : > { %v694_v11 = vpop.f32.mrf.mxu0 }
 0x118   : > { %v801_v14 = vmul.f32 %v3264_v10, %v694_v11  ;;  %v1093_v11 = vpop.f32.mrf.mxu1 }
 0x11a   : > { %v833_v16 = vpack.c.bf16 %v801_v14, %v801_v14 }
 0x11b   : > { %v2613_v31 = vld [vmem:[#allocation2 + $0x44] sm:$0xf] }
 0x11c   : > { %849 = vst [vmem:[#allocation2 + $0x4c] sm:$0xf] %v833_v16  ;;  %v2657_v16 = vld [vmem:[#allocation6 + $0x20] sm:$0xff] }
 0x11d   : > { %1606 = vmatpush.bf16.msrb.mxu0 %v2657_v16 }
 0x11f   : > { %v697_v19 = vpop.f32.mrf.mxu0 }
 0x120   : > { %v802_v21 = vmul.f32 %v3269_v18, %v697_v19  ;;  %v1095_v19 = vpop.f32.mrf.mxu1 }
 0x121   : > { %1607 = vmatpush.bf16.msrb.mxu0 %v2656_v20 }
 0x122   : > { %v834_v27 = vpack.c.bf16 %v802_v21, %v802_v21 }
 0x123   : > { %v2297_v32 = vld [vmem:[#allocation2 + $0x48] sm:$0xf0] }
 0x124   : > { %850 = vst [vmem:[#allocation2 + $0x54] sm:$0xf] %v834_v27  ;;  %v2300_v33 = vor.u32 %v2613_v31, %v2297_v32  ;;  %v2655_v27 = vld [vmem:[#allocation6 + $0x10] sm:$0xff]  ;;  %v2654_v31 = vld [vmem:[#allocation6 + $0x8] sm:$0xff] }
 0x125   : > { %1608 = vmatpush.bf16.msrb.mxu0 %v2655_v27 }
 0x126   : > { %1161 = vmatmul.bf16.gmra.mxu2 %v2300_v33  ;;  %v2653_v33 = vld [vmem:[#allocation6] sm:$0xff] }
 0x127   : > { %v699_v35 = vpop.f32.mrf.mxu0 }
 0x128   : > { %v803_v40 = vmul.f32 %v3272_v34, %v699_v35  ;;  %v1098_v32 = vpop.f32.mrf.mxu1  ;;  %v3292_v35 = vld [vmem:[%s3483_s4] ss:$0 sm:$0xff] }
 0x129   : > { %1609 = vmatpush.bf16.msrb.mxu0 %v2654_v31  ;;  %v1094_v39 = vadd.f32 %v3292_v35, %v1093_v11  ;;  %v1096_v47 = vadd.f32 %v3292_v35, %v1095_v19 }
 0x12a   : > { %v835_v41 = vpack.c.bf16 %v803_v40, %v803_v40 }
 0x12b   : > { %v2615_v51 = vld [vmem:[#allocation2 + $0x54] sm:$0xf] }
 0x12c   : > { %851 = vst [vmem:[#allocation2 + $0x5c] sm:$0xf] %v835_v41 }
 0x12d   : > { %1610 = vmatpush.bf16.msrb.mxu0 %v2653_v33 }
 0x12f   : > { %v702_v43 = vpop.f32.mrf.mxu0 }
 0x130   : > { %v804_v46 = vmul.f32 %v3277_v42, %v702_v43  ;;  %v1100_v36 = vpop.f32.mrf.mxu1 }
 0x132   : > { %v836_v50 = vpack.c.bf16 %v804_v46, %v804_v46 }
 0x133   : > { %v2305_v52 = vld [vmem:[#allocation2 + $0x58] sm:$0xf0] }
 0x134   : > { %852 = vst [vmem:[#allocation2 + $0x64] sm:$0xf] %v836_v50  ;;  %v2308_v53 = vor.u32 %v2615_v51, %v2305_v52  ;;  %v1099_v52 = vadd.f32 %v3292_v35, %v1098_v32 }
 0x136   : > { %1166 = vmatmul.bf16.gmra.mxu2 %v2308_v53 }
 0x137   : > { %v704_v58 = vpop.f32.mrf.mxu0 }
 0x138   : > { %v805_v59 = vmul.f32 %v3280_v57, %v704_v58  ;;  %v1103_v46 = vpop.f32.mrf.mxu1 }
 0x139   : > { %v1104_v16 = vadd.f32 %v3292_v35, %v1103_v46 }
 0x13a   : > { %v837_v61 = vpack.c.bf16 %v805_v59, %v805_v59 }
 0x13b   : > { %v2617_v4 = vld [vmem:[#allocation2 + $0x64] sm:$0xf] }
 0x13c   : > { %853 = vst [vmem:[#allocation2 + $0x6c] sm:$0xf] %v837_v61 }
 0x13f   : > { %v707_v1 = vpop.f32.mrf.mxu0 }
 0x140   : > { %v806_v2 = vmul.f32 %v3283_v0, %v707_v1  ;;  %v1105_v60 = vpop.f32.mrf.mxu1 }
 0x142   : > { %v838_v3 = vpack.c.bf16 %v806_v2, %v806_v2 }
 0x143   : > { %v2313_v6 = vld [vmem:[#allocation2 + $0x68] sm:$0xf0] }
 0x144   : > { %854 = vst [vmem:[#allocation2 + $0x74] sm:$0xf] %v838_v3  ;;  %v2316_v7 = vor.u32 %v2617_v4, %v2313_v6 }
 0x146   : > { %1171 = vmatmul.bf16.gmra.mxu2 %v2316_v7  ;;  %v1101_v7 = vadd.f32 %v3292_v35, %v1100_v36 }
 0x147   : > { %v709_v9 = vpop.f32.mrf.mxu0 }
 0x148   : > { %v807_v12 = vmul.f32 %v3286_v8, %v709_v9  ;;  %v1108_v13 = vpop.f32.mrf.mxu1 }
 0x14a   : > { %v839_v14 = vpack.c.bf16 %v807_v12, %v807_v12 }
 0x14b   : > { %v2619_v21 = vld [vmem:[#allocation2 + $0x74] sm:$0xf] }
 0x14c   : > { %855 = vst [vmem:[#allocation2 + $0x7c] sm:$0xf] %v839_v14 }
 0x150   : > { %v1110_v32 = vpop.f32.mrf.mxu1 }
 0x153   : > { %v2321_v24 = vld [vmem:[#allocation2 + $0x78] sm:$0xf0] }
 0x154   : > { %v2324_v25 = vor.u32 %v2619_v21, %v2321_v24 }
 0x156   : > { %1176 = vmatmul.bf16.gmra.mxu2 %v2324_v25 }
 0x169   : > { %v1142_v40 = vpop.f32.mrf.mxu2 }
 0x16a   : > { %v1143_v41 = vadd.f32 %v1142_v40, %v1094_v39  ;;  %v1106_v40 = vadd.f32 %v3292_v35, %v1105_v60 }
 0x16c   : > { %v1182_v43 = vmax.f32 %v1143_v41, 0.0 }
 0x16e   : > { %v1198_v45 = vpack.c.bf16 %v1182_v43, %v1182_v43 }
 0x170   : > { %1327 = vst [vmem:[#allocation2] sm:$0xf] %v1198_v45  ;;  %v1230_v54 = vunpack.c.l.b16 %v1198_v45 }
 0x171   : > { %v1144_v48 = vpop.f32.mrf.mxu2 }
 0x172   : > { %v1145_v50 = vadd.f32 %v1144_v48, %v1096_v47  ;;  %v1109_v47 = vadd.f32 %v3292_v35, %v1108_v13 }
 0x174   : > { %v1183_v51 = vmax.f32 %v1145_v50, 0.0  ;;  %v1113_v50 = vpop.f32.mrf.mxu1 }
 0x176   : > { %v1199_v53 = vpack.c.bf16 %v1183_v51, %v1183_v51 }
 0x177   : > { %v2391_v4 = vld [vmem:[#allocation2] sm:$0xf] }
 0x178   : > { %1328 = vst [vmem:[#allocation2 + $0x8] sm:$0xf] %v1199_v53  ;;  %v1231_v58 = vunpack.c.l.b16 %v1199_v53 }
 0x179   : > { %v1147_v59 = vpop.f32.mrf.mxu2 }
 0x17a   : > { %v1148_v61 = vadd.f32 %v1147_v59, %v1099_v52  ;;  %v3297_v1 = vpack.c.b16 %v1231_v58, %v1230_v54 }
 0x17c   : > { %v1184_v2 = vmax.f32 %v1148_v61, 0.0 }
 0x17e   : > { %v1200_v3 = vpack.c.bf16 %v1184_v2, %v1184_v2 }
 0x17f   : > { %v2638_v6 = vld [vmem:[#allocation2 + $0x4] sm:$0xf0] }
 0x180   : > { %1329 = vst [vmem:[#allocation2 + $0x10] sm:$0xf] %v1200_v3  ;;  %v2392_v9 = vor.u32 %v2638_v6, %v2391_v4  ;;  %v1232_v20 = vunpack.c.l.b16 %v1200_v3  ;;  %v1111_v3 = vadd.f32 %v3292_v35, %v1110_v32 }
 0x181   : > { %v1149_v11 = vpop.f32.mrf.mxu2 }
 0x182   : > { %v1150_v12 = vadd.f32 %v1149_v11, %v1101_v7  ;;  %1611 = vmatmul.bf16.vlgmr.msrb.gmra.mxu0 %v2392_v9  ;;  %v1115_v7 = vpop.f32.mrf.mxu1 }
 0x184   : > { %v1185_v14 = vmax.f32 %v1150_v12, 0.0  ;;  %v1114_v12 = vadd.f32 %v3292_v35, %v1113_v50 }
 0x186   : > { %v1201_v19 = vpack.c.bf16 %v1185_v14, %v1185_v14 }
 0x187   : > { %v2399_v36 = vld [vmem:[#allocation2 + $0x10] sm:$0xf] }
 0x188   : > { %1330 = vst [vmem:[#allocation2 + $0x18] sm:$0xf] %v1201_v19  ;;  %v1233_v21 = vunpack.c.l.b16 %v1201_v19 }
 0x189   : > { %v1152_v24 = vpop.f32.mrf.mxu2 }
 0x18a   : > { %v1153_v25 = vadd.f32 %v1152_v24, %v1104_v16  ;;  %v3301_v27 = vpack.c.b16 %v1233_v21, %v1232_v20  ;;  %v1118_v24 = vpop.f32.mrf.mxu1 }
 0x18c   : > { %v1186_v31 = vmax.f32 %v1153_v25, 0.0 }
 0x18e   : > { %v1202_v33 = vpack.c.bf16 %v1186_v31, %v1186_v31 }
 0x18f   : > { %v2640_v39 = vld [vmem:[#allocation2 + $0x14] sm:$0xf0] }
 0x190   : > { %1331 = vst [vmem:[#allocation2 + $0x20] sm:$0xf] %v1202_v33  ;;  %v2400_v41 = vor.u32 %v2640_v39, %v2399_v36  ;;  %v1234_v51 = vunpack.c.l.b16 %v1202_v33  ;;  %v1116_v36 = vadd.f32 %v3292_v35, %v1115_v7 }
 0x191   : > { %v1154_v43 = vpop.f32.mrf.mxu2 }
 0x192   : > { %v1155_v45 = vadd.f32 %v1154_v43, %v1106_v40  ;;  %1616 = vmatmul.bf16.gmra.mxu0 %v2400_v41 }
 0x194   : > { %v1187_v46 = vmax.f32 %v1155_v45, 0.0  ;;  %v1120_v45 = vpop.f32.mrf.mxu1 }
 0x196   : > { %v1203_v48 = vpack.c.bf16 %v1187_v46, %v1187_v46  ;;  %v1119_v46 = vadd.f32 %v3292_v35, %v1118_v24 }
 0x197   : > { %v2407_v60 = vld [vmem:[#allocation2 + $0x20] sm:$0xf] }
 0x198   : > { %1332 = vst [vmem:[#allocation2 + $0x28] sm:$0xf] %v1203_v48  ;;  %v1235_v52 = vunpack.c.l.b16 %v1203_v48 }
 0x199   : > { %v1157_v53 = vpop.f32.mrf.mxu2 }
 0x19a   : > { %v1158_v54 = vadd.f32 %v1157_v53, %v1109_v47  ;;  %v3305_v58 = vpack.c.b16 %v1235_v52, %v1234_v51 }
 0x19c   : > { %v1188_v59 = vmax.f32 %v1158_v54, 0.0  ;;  %v1123_v53 = vpop.f32.mrf.mxu1 }
 0x19e   : > { %v1204_v61 = vpack.c.bf16 %v1188_v59, %v1188_v59 }
 0x19f   : > { %v2642_v2 = vld [vmem:[#allocation2 + $0x24] sm:$0xf0] }
 0x1a0   : > { %1333 = vst [vmem:[#allocation2 + $0x30] sm:$0xf] %v1204_v61  ;;  %v2408_v4 = vor.u32 %v2642_v2, %v2407_v60  ;;  %v1236_v14 = vunpack.c.l.b16 %v1204_v61  ;;  %v1121_v61 = vadd.f32 %v3292_v35, %v1120_v45 }
 0x1a1   : > { %v1159_v6 = vpop.f32.mrf.mxu2 }
 0x1a2   : > { %v1160_v9 = vadd.f32 %v1159_v6, %v1111_v3  ;;  %1621 = vmatmul.bf16.gmra.mxu0 %v2408_v4  ;;  %v1124_v6 = vadd.f32 %v3292_v35, %v1123_v53 }
 0x1a4   : > { %v1189_v11 = vmax.f32 %v1160_v9, 0.0  ;;  %v1125_v9 = vpop.f32.mrf.mxu1 }
 0x1a6   : > { %v1205_v13 = vpack.c.bf16 %v1189_v11, %v1189_v11 }
 0x1a7   : > { %v2415_v32 = vld [vmem:[#allocation2 + $0x30] sm:$0xf] }
 0x1a8   : > { %1334 = vst [vmem:[#allocation2 + $0x38] sm:$0xf] %v1205_v13  ;;  %v1237_v16 = vunpack.c.l.b16 %v1205_v13 }
 0x1a9   : > { %v1162_v19 = vpop.f32.mrf.mxu2 }
 0x1aa   : > { %v1163_v20 = vadd.f32 %v1162_v19, %v1114_v12  ;;  %v3309_v21 = vpack.c.b16 %v1237_v16, %v1236_v14 }
 0x1ac   : > { %v1190_v25 = vmax.f32 %v1163_v20, 0.0  ;;  %v1126_v20 = vadd.f32 %v3292_v35, %v1125_v9 }
 0x1ae   : > { %v3311_v31 = vpack.c.bf16 %v1190_v25, %v1190_v25 }
 0x1af   : > { %v2644_v33 = vld [vmem:[#allocation2 + $0x34] sm:$0xf0] }
 0x1b0   : > { %1335 = vst [vmem:[#allocation2 + $0x40] sm:$0xf] %v3311_v31  ;;  %v2416_v39 = vor.u32 %v2644_v33, %v2415_v32  ;;  %v1128_v33 = vpop.f32.mrf.mxu1 }
 0x1b1   : > { %v1164_v40 = vpop.f32.mrf.mxu2 }
 0x1b2   : > { %v1165_v41 = vadd.f32 %v1164_v40, %v1116_v36  ;;  %1626 = vmatmul.bf16.gmra.mxu0 %v2416_v39  ;;  %v1129_v39 = vadd.f32 %v3292_v35, %v1128_v33 }
 0x1b4   : > { %v1191_v43 = vmax.f32 %v1165_v41, 0.0 }
 0x1b6   : > { %v3316_v47 = vpack.c.bf16 %v1191_v43, %v1191_v43 }
 0x1b7   : > { %v2423_v54 = vld [vmem:[#allocation2 + $0x40] sm:$0xf] }
 0x1b8   : > { %1336 = vst [vmem:[#allocation2 + $0x48] sm:$0xf] %v3316_v47 }
 0x1b9   : > { %v1167_v48 = vpop.f32.mrf.mxu2 }
 0x1ba   : > { %v1168_v50 = vadd.f32 %v1167_v48, %v1119_v46  ;;  %v1130_v46 = vpop.f32.mrf.mxu1 }
 0x1bb   : > { %v1131_v53 = vadd.f32 %v3292_v35, %v1130_v46 }
 0x1bc   : > { %v1192_v51 = vmax.f32 %v1168_v50, 0.0 }
 0x1be   : > { %v3319_v52 = vpack.c.bf16 %v1192_v51, %v1192_v51 }
 0x1bf   : > { %v2646_v59 = vld [vmem:[#allocation2 + $0x44] sm:$0xf0] }
 0x1c0   : > { %1337 = vst [vmem:[#allocation2 + $0x50] sm:$0xf] %v3319_v52  ;;  %v2424_v60 = vor.u32 %v2646_v59, %v2423_v54 }
 0x1c1   : > { %v1169_v2 = vpop.f32.mrf.mxu2 }
 0x1c2   : > { %v1170_v3 = vadd.f32 %v1169_v2, %v1121_v61  ;;  %1631 = vmatmul.bf16.gmra.mxu0 %v2424_v60 }
 0x1c4   : > { %v1193_v4 = vmax.f32 %v1170_v3, 0.0 }
 0x1c6   : > { %v1209_v7 = vpack.c.bf16 %v1193_v4, %v1193_v4 }
 0x1c7   : > { %v2431_v16 = vld [vmem:[#allocation2 + $0x50] sm:$0xf] }
 0x1c8   : > { %1338 = vst [vmem:[#allocation2 + $0x58] sm:$0xf] %v1209_v7 }
 0x1c9   : > { %v1172_v11 = vpop.f32.mrf.mxu2 }
 0x1ca   : > { %v1173_v12 = vadd.f32 %v1172_v11, %v1124_v6 }
 0x1cc   : > { %v1194_v13 = vmax.f32 %v1173_v12, 0.0 }
 0x1ce   : > { %v1210_v14 = vpack.c.bf16 %v1194_v13, %v1194_v13  ;;  %v1241_v13 = vunpack.c.l.b16 %v1209_v7  ;;  %v2668_v7 = vld [vmem:[#allocation6 + $0x78] sm:$0xff] }
 0x1cf   : > { %v2648_v19 = vld [vmem:[#allocation2 + $0x54] sm:$0xf0]  ;;  %1652 = vmatpush.bf16.msrb.mxu1 %v2668_v7 }
 0x1d0   : > { %1339 = vst [vmem:[#allocation2 + $0x60] sm:$0xf] %v1210_v14  ;;  %v2432_v24 = vor.u32 %v2648_v19, %v2431_v16  ;;  %v1242_v11 = vunpack.c.l.b16 %v1210_v14 }
 0x1d1   : > { %v1174_v25 = vpop.f32.mrf.mxu2 }
 0x1d2   : > { %v1175_v32 = vadd.f32 %v1174_v25, %v1126_v20  ;;  %1636 = vmatmul.bf16.gmra.mxu0 %v2432_v24  ;;  %v1240_v20 = vunpack.c.l.b16 %v3319_v52  ;;  %v1239_v25 = vunpack.c.l.b16 %v3316_v47  ;;  %v2667_v52 = vld [vmem:[#allocation6 + $0x70] sm:$0xff]  ;;  %v2666_v47 = vld [vmem:[#allocation6 + $0x68] sm:$0xff] }
 0x1d3   : > { %1653 = vmatpush.bf16.msrb.mxu1 %v2667_v52 }
 0x1d4   : > { %v1195_v36 = vmax.f32 %v1175_v32, 0.0  ;;  %v1251_v24 = vpack.c.b16 %v1241_v13, %v1240_v20  ;;  %v1238_v32 = vunpack.c.l.b16 %v3311_v31  ;;  %v2665_v31 = vld [vmem:[#allocation6 + $0x60] sm:$0xff] }
 0x1d6   : > { %v1211_v40 = vpack.c.bf16 %v1195_v36, %v1195_v36  ;;  %v1250_v33 = vpack.c.b16 %v1239_v25, %v1238_v32 }
 0x1d7   : > { %v2439_v50 = vld [vmem:[#allocation2 + $0x60] sm:$0xf]  ;;  %1654 = vmatpush.bf16.msrb.mxu1 %v2666_v47 }
 0x1d8   : > { %1340 = vst [vmem:[#allocation2 + $0x68] sm:$0xf] %v1211_v40  ;;  %v1243_v9 = vunpack.c.l.b16 %v1211_v40 }
 0x1d9   : > { %v1177_v41 = vpop.f32.mrf.mxu2 }
 0x1da   : > { %v1178_v43 = vadd.f32 %v1177_v41, %v1129_v39  ;;  %v1252_v12 = vpack.c.b16 %v1243_v9, %v1242_v11  ;;  %v2673_v9 = vld [vmem:[#allocation8 + $0x20] sm:$0xff] }
 0x1db   : > { %1655 = vmatpush.bf16.msrb.mxu1 %v2665_v31 }
 0x1dc   : > { %v1196_v45 = vmax.f32 %v1178_v43, 0.0  ;;  %v2675_v43 = vld [vmem:[#allocation8 + $0x30] sm:$0xff] }
 0x1de   : > { %v1212_v48 = vpack.c.bf16 %v1196_v45, %v1196_v45 }
 0x1df   : > { %v2650_v51 = vld [vmem:[#allocation2 + $0x64] sm:$0xf0] }
 0x1e0   : > { %1341 = vst [vmem:[#allocation2 + $0x70] sm:$0xf] %v1212_v48  ;;  %v2440_v54 = vor.u32 %v2650_v51, %v2439_v50  ;;  %v1244_v3 = vunpack.c.l.b16 %v1212_v48 }
 0x1e1   : > { %v1179_v59 = vpop.f32.mrf.mxu2 }
 0x1e2   : > { %v1180_v61 = vadd.f32 %v1179_v59, %v1131_v53  ;;  %1641 = vmatmul.bf16.gmra.mxu0 %v2440_v54  ;;  %v2674_v54 = vld [vmem:[#allocation8 + $0x28] sm:$0xff] }
 0x1e4   : > { %v1197_v60 = vmax.f32 %v1180_v61, 0.0 }
 0x1e6   : > { %v1213_v2 = vpack.c.bf16 %v1197_v60, %v1197_v60 }
 0x1e7   : > { %v2447_v16 = vld [vmem:[#allocation2 + $0x70] sm:$0xf] }
 0x1e8   : > { %1342 = vst [vmem:[#allocation2 + $0x78] sm:$0xf] %v1213_v2  ;;  %v1245_v4 = vunpack.c.l.b16 %v1213_v2 }
 0x1ea   : > { %v1253_v6 = vpack.c.b16 %v1245_v4, %v1244_v3 }
 0x1ec   : > { %1262 = vmatpush.bf16.msra.mxu3 %v1253_v6 }
 0x1ef   : > { %v2652_v19 = vld [vmem:[#allocation2 + $0x74] sm:$0xf0] }
 0x1f0   : > { %1263 = vmatpush.bf16.msra.mxu3 %v1252_v12  ;;  %v2448_v35 = vor.u32 %v2652_v19, %v2447_v16 }
 0x1f2   : > { %1646 = vmatmul.bf16.gmra.mxu0 %v2448_v35 }
 0x1f4   : > { %1264 = vmatpush.bf16.msra.mxu3 %v1251_v24  ;;  %v2672_v24 = vld [vmem:[#allocation8 + $0x18] sm:$0xff] }
 0x1f8   : > { %1265 = vmatpush.bf16.msra.mxu3 %v1250_v33 }
 0x1fc   : > { %1266 = vmatpush.bf16.msra.mxu3 %v3309_v21  ;;  %v2676_v21 = vld [vmem:[#allocation8 + $0x38] sm:$0xff] }
 0x1fd   : > { %1789 = vmatpush.bf16.msrb.mxu2 %v2676_v21 }
 0x200   : > { %1267 = vmatpush.bf16.msra.mxu3 %v3305_v58  ;;  %v2664_v58 = vld [vmem:[#allocation6 + $0x58] sm:$0xff] }
 0x201   : > { %1656 = vmatpush.bf16.msrb.mxu1 %v2664_v58  ;;  %1790 = vmatpush.bf16.msrb.mxu2 %v2675_v43  ;;  %v2671_v58 = vld [vmem:[#allocation8 + $0x10] sm:$0xff] }
 0x204   : > { %1268 = vmatpush.bf16.msra.mxu3 %v3301_v27  ;;  %v2663_v27 = vld [vmem:[#allocation6 + $0x50] sm:$0xff] }
 0x205   : > { %1657 = vmatpush.bf16.msrb.mxu1 %v2663_v27  ;;  %1791 = vmatpush.bf16.msrb.mxu2 %v2674_v54  ;;  %v2684_v54 = vld [vmem:[#allocation9 + $0x38] sm:$0xff] }
 0x208   : > { %1269 = vmatpush.bf16.msra.mxu3 %v3297_v1 }
 0x209   : > { %1792 = vmatpush.bf16.msrb.mxu2 %v2673_v9 }
 0x20b   : > { %1270 = vmatmul.bf16.vlgmr.msra.gmra.mxu3 %v3186_v17  ;;  %v2662_v17 = vld [vmem:[#allocation6 + $0x48] sm:$0xff] }
 0x20c   : > { %1658 = vmatpush.bf16.msrb.mxu1 %v2662_v17  ;;  %1970 = vmatpush.bf16.msrb.mxu3 %v2684_v54 }
 0x20d   : > { %1793 = vmatpush.bf16.msrb.mxu2 %v2672_v24 }
 0x211   : > { %1794 = vmatpush.bf16.msrb.mxu2 %v2671_v58 }
 0x21b   : > { %1275 = vmatmul.bf16.gmra.mxu3 %v3195_v23  ;;  %v2661_v23 = vld [vmem:[#allocation6 + $0x40] sm:$0xff] }
 0x21c   : > { %1659 = vmatpush.bf16.msrb.mxu1 %v2661_v23 }
 0x22b   : > { %1280 = vmatmul.bf16.gmra.mxu3 %v3201_v26 }
 0x23b   : > { %1285 = vmatmul.bf16.gmra.mxu3 %v3206_v28 }
 0x24b   : > { %1290 = vmatmul.bf16.gmra.mxu3 %v3210_v29 }
 0x25b   : > { %1295 = vmatmul.bf16.gmra.mxu3 %v3214_v30 }
 0x26b   : > { %1300 = vmatmul.bf16.gmra.mxu3 %v3218_v38 }
 0x27b   : > { %1305 = vmatmul.bf16.gmra.mxu3 %v3224_v49 }
 0x28e   : > { %v1271_v26 = vpop.f32.mrf.mxu3 }
 0x28f   : > { %v1311_v1 = vmul.f32 %v1271_v26, %v3229_v56  ;;  %v2670_v26 = vld [vmem:[#allocation8 + $0x8] sm:$0xff] }
 0x290   : > { %1795 = vmatpush.bf16.msrb.mxu2 %v2670_v26  ;;  %v2681_v26 = vld [vmem:[#allocation9 + $0x20] sm:$0xff] }
 0x291   : > { %v1343_v28 = vpack.c.bf16 %v1311_v1, %v1311_v1 }
 0x293   : > { %1359 = vst [vmem:[#allocation2 + $0x4] sm:$0xf] %v1343_v28 }
 0x296   : > { %v1273_v29 = vpop.f32.mrf.mxu3 }
 0x297   : > { %v1312_v14 = vmul.f32 %v1273_v29, %v3232_v63 }
 0x299   : > { %v1344_v36 = vpack.c.bf16 %v1312_v14, %v1312_v14  ;;  %v2669_v14 = vld [vmem:[#allocation8] sm:$0xff] }
 0x29a   : > { %v2637_v40 = vld [vmem:[#allocation2 + $0x4] sm:$0xf]  ;;  %1796 = vmatpush.bf16.msrb.mxu2 %v2669_v14 }
 0x29b   : > { %1360 = vst [vmem:[#allocation2 + $0xc] sm:$0xf] %v1344_v36 }
 0x29e   : > { %v1276_v30 = vpop.f32.mrf.mxu3 }
 0x29f   : > { %v1313_v39 = vmul.f32 %v1276_v30, %v3237_v5 }
 0x2a1   : > { %v1345_v38 = vpack.c.bf16 %v1313_v39, %v1313_v39 }
 0x2a2   : > { %v2393_v41 = vld [vmem:[#allocation2 + $0x8] sm:$0xf0] }
 0x2a3   : > { %1361 = vst [vmem:[#allocation2 + $0x14] sm:$0xf] %v1345_v38  ;;  %v2396_v49 = vor.u32 %v2637_v40, %v2393_v41  ;;  %v1612_v40 = vpop.f32.mrf.mxu0 }
 0x2a5   : > { %1660 = vmatmul.bf16.vlgmr.msrb.gmra.mxu1 %v2396_v49 }
 0x2a6   : > { %v1278_v56 = vpop.f32.mrf.mxu3 }
 0x2a7   : > { %v1314_v45 = vmul.f32 %v1278_v56, %v3240_v15 }
 0x2a9   : > { %v1346_v46 = vpack.c.bf16 %v1314_v45, %v1314_v45 }
 0x2aa   : > { %v2639_v51 = vld [vmem:[#allocation2 + $0x14] sm:$0xf] }
 0x2ab   : > { %1362 = vst [vmem:[#allocation2 + $0x1c] sm:$0xf] %v1346_v46 }
 0x2ae   : > { %v1281_v48 = vpop.f32.mrf.mxu3 }
 0x2af   : > { %v1315_v63 = vmul.f32 %v1281_v48, %v3245_v22  ;;  %v1614_v48 = vpop.f32.mrf.mxu0 }
 0x2b1   : > { %v1347_v50 = vpack.c.bf16 %v1315_v63, %v1315_v63 }
 0x2b2   : > { %v2401_v53 = vld [vmem:[#allocation2 + $0x18] sm:$0xf0] }
 0x2b3   : > { %1363 = vst [vmem:[#allocation2 + $0x24] sm:$0xf] %v1347_v50  ;;  %v2404_v5 = vor.u32 %v2639_v51, %v2401_v53 }
 0x2b5   : > { %1665 = vmatmul.bf16.gmra.mxu1 %v2404_v5  ;;  %v3361_v5 = vld [vmem:[%s3485_s6] ss:$0 sm:$0xff] }
 0x2b6   : > { %v1283_v59 = vpop.f32.mrf.mxu3 }
 0x2b7   : > { %v1316_v61 = vmul.f32 %v1283_v59, %v3248_v37  ;;  %v1617_v51 = vpop.f32.mrf.mxu0  ;;  %v1613_v59 = vadd.f32 %v3361_v5, %v1612_v40 }
 0x2b9   : > { %v1348_v60 = vpack.c.bf16 %v1316_v61, %v1316_v61  ;;  %v1615_v61 = vadd.f32 %v3361_v5, %v1614_v48 }
 0x2ba   : > { %v2641_v4 = vld [vmem:[#allocation2 + $0x24] sm:$0xf] }
 0x2bb   : > { %1364 = vst [vmem:[#allocation2 + $0x2c] sm:$0xf] %v1348_v60 }
 0x2be   : > { %v1286_v2 = vpop.f32.mrf.mxu3 }
 0x2bf   : > { %v1317_v15 = vmul.f32 %v1286_v2, %v3253_v44  ;;  %v1619_v53 = vpop.f32.mrf.mxu0 }
 0x2c1   : > { %v1349_v3 = vpack.c.bf16 %v1317_v15, %v1317_v15 }
 0x2c2   : > { %v2409_v6 = vld [vmem:[#allocation2 + $0x28] sm:$0xf0] }
 0x2c3   : > { %1365 = vst [vmem:[#allocation2 + $0x34] sm:$0xf] %v1349_v3  ;;  %v2412_v22 = vor.u32 %v2641_v4, %v2409_v6 }
 0x2c5   : > { %1670 = vmatmul.bf16.gmra.mxu1 %v2412_v22 }
 0x2c6   : > { %v1288_v11 = vpop.f32.mrf.mxu3 }
 0x2c7   : > { %v1318_v12 = vmul.f32 %v1288_v11, %v3256_v55  ;;  %v2683_v11 = vld [vmem:[#allocation9 + $0x30] sm:$0xff] }
 0x2c8   : > { %1971 = vmatpush.bf16.msrb.mxu3 %v2683_v11 }
 0x2c9   : > { %v1350_v13 = vpack.c.bf16 %v1318_v12, %v1318_v12  ;;  %v1618_v12 = vadd.f32 %v3361_v5, %v1617_v51 }
 0x2ca   : > { %v2643_v35 = vld [vmem:[#allocation2 + $0x34] sm:$0xf] }
 0x2cb   : > { %1366 = vst [vmem:[#allocation2 + $0x3c] sm:$0xf] %v1350_v13  ;;  %v1620_v13 = vadd.f32 %v3361_v5, %v1619_v53 }
 0x2ce   : > { %v1291_v16 = vpop.f32.mrf.mxu3 }
 0x2cf   : > { %v1319_v37 = vmul.f32 %v1291_v16, %v3261_v62 }
 0x2d1   : > { %v1351_v19 = vpack.c.bf16 %v1319_v37, %v1319_v37 }
 0x2d2   : > { %v2417_v20 = vld [vmem:[#allocation2 + $0x38] sm:$0xf0] }
 0x2d3   : > { %1367 = vst [vmem:[#allocation2 + $0x44] sm:$0xf] %v1351_v19  ;;  %v2420_v44 = vor.u32 %v2643_v35, %v2417_v20 }
 0x2d5   : > { %1675 = vmatmul.bf16.gmra.mxu1 %v2420_v44 }
 0x2d6   : > { %v1293_v25 = vpop.f32.mrf.mxu3 }
 0x2d7   : > { %v1320_v32 = vmul.f32 %v1293_v25, %v3264_v10 }
 0x2d9   : > { %v1352_v33 = vpack.c.bf16 %v1320_v32, %v1320_v32  ;;  %v2682_v32 = vld [vmem:[#allocation9 + $0x28] sm:$0xff] }
 0x2da   : > { %v2645_v47 = vld [vmem:[#allocation2 + $0x44] sm:$0xf]  ;;  %1972 = vmatpush.bf16.msrb.mxu3 %v2682_v32 }
 0x2db   : > { %1368 = vst [vmem:[#allocation2 + $0x4c] sm:$0xf] %v1352_v33 }
 0x2de   : > { %v1296_v7 = vpop.f32.mrf.mxu3  ;;  %1973 = vmatpush.bf16.msrb.mxu3 %v2681_v26 }
 0x2df   : > { %v1321_v55 = vmul.f32 %v1296_v7, %v3269_v18 }
 0x2e1   : > { %v1353_v52 = vpack.c.bf16 %v1321_v55, %v1321_v55 }
 0x2e2   : > { %v2425_v31 = vld [vmem:[#allocation2 + $0x48] sm:$0xf0] }
 0x2e3   : > { %1369 = vst [vmem:[#allocation2 + $0x54] sm:$0xf] %v1353_v52  ;;  %v2428_v62 = vor.u32 %v2645_v47, %v2425_v31 }
 0x2e5   : > { %1680 = vmatmul.bf16.gmra.mxu1 %v2428_v62 }
 0x2e6   : > { %v1298_v27 = vpop.f32.mrf.mxu3 }
 0x2e7   : > { %v1322_v17 = vmul.f32 %v1298_v27, %v3272_v34 }
 0x2e9   : > { %v1354_v23 = vpack.c.bf16 %v1322_v17, %v1322_v17 }
 0x2ea   : > { %v2647_v18 = vld [vmem:[#allocation2 + $0x54] sm:$0xf] }
 0x2eb   : > { %1370 = vst [vmem:[#allocation2 + $0x5c] sm:$0xf] %v1354_v23 }
 0x2ee   : > { %v1301_v10 = vpop.f32.mrf.mxu3 }
 0x2ef   : > { %v1323_v1 = vmul.f32 %v1301_v10, %v3277_v42 }
 0x2f1   : > { %v1355_v28 = vpack.c.bf16 %v1323_v1, %v1323_v1 }
 0x2f2   : > { %v2433_v21 = vld [vmem:[#allocation2 + $0x58] sm:$0xf0] }
 0x2f3   : > { %1371 = vst [vmem:[#allocation2 + $0x64] sm:$0xf] %v1355_v28  ;;  %v2436_v29 = vor.u32 %v2647_v18, %v2433_v21 }
 0x2f5   : > { %1685 = vmatmul.bf16.gmra.mxu1 %v2436_v29 }
 0x2f6   : > { %v1303_v36 = vpop.f32.mrf.mxu3 }
 0x2f7   : > { %v1324_v30 = vmul.f32 %v1303_v36, %v3280_v57 }
 0x2f9   : > { %v1356_v39 = vpack.c.bf16 %v1324_v30, %v1324_v30 }
 0x2fa   : > { %v2649_v49 = vld [vmem:[#allocation2 + $0x64] sm:$0xf] }
 0x2fb   : > { %1372 = vst [vmem:[#allocation2 + $0x6c] sm:$0xf] %v1356_v39 }
 0x2fe   : > { %v1306_v34 = vpop.f32.mrf.mxu3 }
 0x2ff   : > { %v1325_v38 = vmul.f32 %v1306_v34, %v3283_v0 }
 0x301   : > { %v1357_v41 = vpack.c.bf16 %v1325_v38, %v1325_v38  ;;  %v2680_v38 = vld [vmem:[#allocation9 + $0x18] sm:$0xff] }
 0x302   : > { %v2441_v42 = vld [vmem:[#allocation2 + $0x68] sm:$0xf0]  ;;  %1974 = vmatpush.bf16.msrb.mxu3 %v2680_v38 }
 0x303   : > { %1373 = vst [vmem:[#allocation2 + $0x74] sm:$0xf] %v1357_v41  ;;  %v2444_v43 = vor.u32 %v2649_v49, %v2441_v42 }
 0x305   : > { %1690 = vmatmul.bf16.gmra.mxu1 %v2444_v43 }
 0x306   : > { %v1308_v56 = vpop.f32.mrf.mxu3 }
 0x307   : > { %v1326_v45 = vmul.f32 %v1308_v56, %v3286_v8  ;;  %v1622_v8 = vpop.f32.mrf.mxu0 }
 0x308   : > { %v1623_v7 = vadd.f32 %v3361_v5, %v1622_v8 }
 0x309   : > { %v1358_v46 = vpack.c.bf16 %v1326_v45, %v1326_v45 }
 0x30a   : > { %v2651_v57 = vld [vmem:[#allocation2 + $0x74] sm:$0xf] }
 0x30b   : > { %1374 = vst [vmem:[#allocation2 + $0x7c] sm:$0xf] %v1358_v46 }
 0x30f   : > { %v1624_v22 = vpop.f32.mrf.mxu0 }
 0x310   : > { %v1625_v55 = vadd.f32 %v3361_v5, %v1624_v22 }
 0x312   : > { %v2449_v63 = vld [vmem:[#allocation2 + $0x78] sm:$0xf0] }
 0x313   : > { %v2452_v50 = vor.u32 %v2651_v57, %v2449_v63  ;;  %v2679_v63 = vld [vmem:[#allocation9 + $0x10] sm:$0xff] }
 0x314   : > { %1975 = vmatpush.bf16.msrb.mxu3 %v2679_v63 }
 0x315   : > { %1695 = vmatmul.bf16.gmra.mxu1 %v2452_v50 }
 0x317   : > { %v1627_v35 = vpop.f32.mrf.mxu0 }
 0x318   : > { %v1628_v10 = vadd.f32 %v3361_v5, %v1627_v35 }
 0x31f   : > { %v1629_v33 = vpop.f32.mrf.mxu0 }
 0x320   : > { %v1630_v1 = vadd.f32 %v3361_v5, %v1629_v33 }
 0x322   : > { %v1661_v0 = vpop.f32.mrf.mxu1 }
 0x323   : > { %v1662_v60 = vadd.f32 %v1661_v0, %v1613_v59 }
 0x325   : > { %v1701_v3 = vmax.f32 %v1662_v60, 0.0 }
 0x327   : > { %v1632_v17 = vpop.f32.mrf.mxu0 }
 0x328   : > { %v1633_v40 = vadd.f32 %v3361_v5, %v1632_v17 }
 0x32a   : > { %v1663_v2 = vpop.f32.mrf.mxu1 }
 0x32b   : > { %v1664_v15 = vadd.f32 %v1663_v2, %v1615_v61  ;;  %v2678_v2 = vld [vmem:[#allocation9 + $0x8] sm:$0xff] }
 0x32c   : > { %1976 = vmatpush.bf16.msrb.mxu3 %v2678_v2 }
 0x32d   : > { %v1702_v4 = vmax.f32 %v1664_v15, 0.0 }
 0x32f   : > { %v1717_v6 = vpack.c.bf16 %v1702_v4, %v1701_v3  ;;  %v1634_v18 = vpop.f32.mrf.mxu0 }
 0x330   : > { %v1635_v41 = vadd.f32 %v3361_v5, %v1634_v18 }
 0x331   : > { %1797 = vmatmul.bf16.vlgmr.msrb.gmra.mxu2 %v1717_v6 }
 0x332   : > { %v1666_v9 = vpop.f32.mrf.mxu1 }
 0x333   : > { %v1667_v16 = vadd.f32 %v1666_v9, %v1618_v12 }
 0x335   : > { %v1703_v20 = vmax.f32 %v1667_v16, 0.0 }
 0x337   : > { %v1637_v34 = vpop.f32.mrf.mxu0 }
 0x338   : > { %v1638_v50 = vadd.f32 %v3361_v5, %v1637_v34 }
 0x33a   : > { %v1668_v37 = vpop.f32.mrf.mxu1 }
 0x33b   : > { %v1669_v19 = vadd.f32 %v1668_v37, %v1620_v13 }
 0x33d   : > { %v1704_v44 = vmax.f32 %v1669_v19, 0.0 }
 0x33f   : > { %v1718_v24 = vpack.c.bf16 %v1704_v44, %v1703_v20  ;;  %v1639_v46 = vpop.f32.mrf.mxu0 }
 0x340   : > { %v1640_v53 = vadd.f32 %v3361_v5, %v1639_v46 }
 0x341   : > { %1802 = vmatmul.bf16.gmra.mxu2 %v1718_v24 }
 0x342   : > { %v1671_v25 = vpop.f32.mrf.mxu1 }
 0x343   : > { %v1672_v52 = vadd.f32 %v1671_v25, %v1623_v7  ;;  %v2677_v25 = vld [vmem:[#allocation9] sm:$0xff] }
 0x344   : > { %1977 = vmatpush.bf16.msrb.mxu3 %v2677_v25 }
 0x345   : > { %v1705_v62 = vmax.f32 %v1672_v52, 0.0 }
 0x347   : > { %v1642_v51 = vpop.f32.mrf.mxu0 }
 0x348   : > { %v1643_v4 = vadd.f32 %v3361_v5, %v1642_v51 }
 0x34a   : > { %v1673_v47 = vpop.f32.mrf.mxu1 }
 0x34b   : > { %v1674_v31 = vadd.f32 %v1673_v47, %v1625_v55 }
 0x34d   : > { %v1706_v58 = vmax.f32 %v1674_v31, 0.0  ;;  %v3382_v31 = vld [vmem:[%s3487_s8] ss:$0 sm:$0xff] }
 0x34f   : > { %v1719_v27 = vpack.c.bf16 %v1706_v58, %v1705_v62  ;;  %v1644_v15 = vpop.f32.mrf.mxu0 }
 0x350   : > { %v1645_v6 = vadd.f32 %v3361_v5, %v1644_v15 }
 0x351   : > { %1807 = vmatmul.bf16.gmra.mxu2 %v1719_v27 }
 0x352   : > { %v1676_v23 = vpop.f32.mrf.mxu1 }
 0x353   : > { %v1677_v28 = vadd.f32 %v1676_v23, %v1628_v10 }
 0x355   : > { %v1707_v14 = vmax.f32 %v1677_v28, 0.0 }
 0x357   : > { %v1647_v12 = vpop.f32.mrf.mxu0 }
 0x358   : > { %v1648_v20 = vadd.f32 %v3361_v5, %v1647_v12 }
 0x35a   : > { %v1678_v21 = vpop.f32.mrf.mxu1 }
 0x35b   : > { %v1679_v29 = vadd.f32 %v1678_v21, %v1630_v1 }
 0x35d   : > { %v1708_v36 = vmax.f32 %v1679_v29, 0.0 }
 0x35f   : > { %v1720_v30 = vpack.c.bf16 %v1708_v36, %v1707_v14  ;;  %v1649_v35 = vpop.f32.mrf.mxu0 }
 0x360   : > { %v1650_v44 = vadd.f32 %v3361_v5, %v1649_v35  ;;  %v3388_v5 = vld [vmem:[%s3488_s9] ss:$0 sm:$0xff] }
 0x361   : > { %1812 = vmatmul.bf16.gmra.mxu2 %v1720_v30 }
 0x362   : > { %v1681_v39 = vpop.f32.mrf.mxu1 }
 0x363   : > { %v1682_v49 = vadd.f32 %v1681_v39, %v1633_v40 }
 0x365   : > { %v1709_v56 = vmax.f32 %v1682_v49, 0.0 }
 0x36a   : > { %v1683_v42 = vpop.f32.mrf.mxu1 }
 0x36b   : > { %v1684_v43 = vadd.f32 %v1683_v42, %v1635_v41 }
 0x36d   : > { %v1710_v45 = vmax.f32 %v1684_v43, 0.0 }
 0x36f   : > { %v1721_v48 = vpack.c.bf16 %v1710_v45, %v1709_v56 }
 0x371   : > { %1817 = vmatmul.bf16.gmra.mxu2 %v1721_v48 }
 0x372   : > { %v1686_v57 = vpop.f32.mrf.mxu1 }
 0x373   : > { %v1687_v0 = vadd.f32 %v1686_v57, %v1638_v50 }
 0x375   : > { %v1711_v8 = vmax.f32 %v1687_v0, 0.0 }
 0x37a   : > { %v1688_v54 = vpop.f32.mrf.mxu1 }
 0x37b   : > { %v1689_v59 = vadd.f32 %v1688_v54, %v1640_v53 }
 0x37d   : > { %v1712_v61 = vmax.f32 %v1689_v59, 0.0 }
 0x37f   : > { %v1722_v60 = vpack.c.bf16 %v1712_v61, %v1711_v8 }
 0x381   : > { %1822 = vmatmul.bf16.gmra.mxu2 %v1722_v60 }
 0x382   : > { %v1691_v3 = vpop.f32.mrf.mxu1 }
 0x383   : > { %v1692_v22 = vadd.f32 %v1691_v3, %v1643_v4 }
 0x385   : > { %v1713_v13 = vmax.f32 %v1692_v22, 0.0 }
 0x38a   : > { %v1693_v9 = vpop.f32.mrf.mxu1 }
 0x38b   : > { %v1694_v11 = vadd.f32 %v1693_v9, %v1645_v6 }
 0x38d   : > { %v1714_v16 = vmax.f32 %v1694_v11, 0.0 }
 0x38f   : > { %v1723_v37 = vpack.c.bf16 %v1714_v16, %v1713_v13 }
 0x391   : > { %1827 = vmatmul.bf16.gmra.mxu2 %v1723_v37 }
 0x392   : > { %v1696_v19 = vpop.f32.mrf.mxu1 }
 0x393   : > { %v1697_v24 = vadd.f32 %v1696_v19, %v1648_v20 }
 0x395   : > { %v1715_v7 = vmax.f32 %v1697_v24, 0.0 }
 0x39a   : > { %v1698_v32 = vpop.f32.mrf.mxu1 }
 0x39b   : > { %v1699_v33 = vadd.f32 %v1698_v32, %v1650_v44 }
 0x39d   : > { %v1716_v55 = vmax.f32 %v1699_v33, 0.0 }
 0x39f   : > { %v1724_v52 = vpack.c.bf16 %v1716_v55, %v1715_v7 }
 0x3a1   : > { %1832 = vmatmul.bf16.gmra.mxu2 %v1724_v52 }
 0x3b4   : > { %v1798_v47 = vpop.f32.mrf.mxu2 }
 0x3b5   : > { %v1842_v62 = vmul.f32 %v3382_v31, %v1798_v47 }
 0x3b7   : > { %v1862_v27 = vadd.f32 %v3388_v5, %v1842_v62 }
 0x3b9   : > { %v1878_v26 = vmax.f32 %v1862_v27, 0.0 }
 0x3bc   : > { %v1800_v58 = vpop.f32.mrf.mxu2 }
 0x3bd   : > { %v1843_v17 = vmul.f32 %v3382_v31, %v1800_v58 }
 0x3bf   : > { %v1863_v23 = vadd.f32 %v3388_v5, %v1843_v17 }
 0x3c1   : > { %v1879_v10 = vmax.f32 %v1863_v23, 0.0 }
 0x3c3   : > { %v1894_v1 = vpack.c.bf16 %v1879_v10, %v1878_v26 }
 0x3c4   : > { %v1803_v28 = vpop.f32.mrf.mxu2 }
 0x3c5   : > { %1978 = vmatmul.bf16.vlgmr.msrb.gmra.mxu3 %v1894_v1  ;;  %v1844_v18 = vmul.f32 %v3382_v31, %v1803_v28 }
 0x3c7   : > { %v1864_v29 = vadd.f32 %v3388_v5, %v1844_v18  ;;  %v2778_v18 = vld [vmem:[%s3490_s11] ss:$0 sm:$0xff] }
 0x3c9   : > { %v1880_v30 = vmax.f32 %v1864_v29, 0.0 }
 0x3cc   : > { %v1805_v21 = vpop.f32.mrf.mxu2 }
 0x3cd   : > { %v1845_v14 = vmul.f32 %v3382_v31, %v1805_v21 }
 0x3cf   : > { %v1865_v36 = vadd.f32 %v3388_v5, %v1845_v14 }
 0x3d1   : > { %v1881_v39 = vmax.f32 %v1865_v36, 0.0 }
 0x3d3   : > { %v1895_v34 = vpack.c.bf16 %v1881_v39, %v1880_v30 }
 0x3d4   : > { %v1808_v38 = vpop.f32.mrf.mxu2 }
 0x3d5   : > { %1983 = vmatmul.bf16.gmra.mxu3 %v1895_v34  ;;  %v1846_v40 = vmul.f32 %v3382_v31, %v1808_v38 }
 0x3d7   : > { %v1866_v49 = vadd.f32 %v3388_v5, %v1846_v40 }
 0x3d9   : > { %v1882_v56 = vmax.f32 %v1866_v49, 0.0 }
 0x3dc   : > { %v1810_v41 = vpop.f32.mrf.mxu2 }
 0x3dd   : > { %v1847_v42 = vmul.f32 %v3382_v31, %v1810_v41 }
 0x3df   : > { %v1867_v43 = vadd.f32 %v3388_v5, %v1847_v42 }
 0x3e1   : > { %v1883_v45 = vmax.f32 %v1867_v43, 0.0 }
 0x3e3   : > { %v1896_v46 = vpack.c.bf16 %v1883_v45, %v1882_v56 }
 0x3e4   : > { %v1813_v48 = vpop.f32.mrf.mxu2 }
 0x3e5   : > { %1988 = vmatmul.bf16.gmra.mxu3 %v1896_v46  ;;  %v1848_v57 = vmul.f32 %v3382_v31, %v1813_v48 }
 0x3e7   : > { %v1868_v50 = vadd.f32 %v3388_v5, %v1848_v57 }
 0x3e9   : > { %v1884_v0 = vmax.f32 %v1868_v50, 0.0 }
 0x3ec   : > { %v1815_v63 = vpop.f32.mrf.mxu2 }
 0x3ed   : > { %v1849_v51 = vmul.f32 %v3382_v31, %v1815_v63 }
 0x3ef   : > { %v1869_v53 = vadd.f32 %v3388_v5, %v1849_v51 }
 0x3f1   : > { %v1885_v54 = vmax.f32 %v1869_v53, 0.0 }
 0x3f3   : > { %v1897_v59 = vpack.c.bf16 %v1885_v54, %v1884_v0 }
 0x3f4   : > { %v1818_v8 = vpop.f32.mrf.mxu2 }
 0x3f5   : > { %1993 = vmatmul.bf16.gmra.mxu3 %v1897_v59  ;;  %v1850_v61 = vmul.f32 %v3382_v31, %v1818_v8 }
 0x3f7   : > { %v1870_v2 = vadd.f32 %v3388_v5, %v1850_v61 }
 0x3f9   : > { %v1886_v4 = vmax.f32 %v1870_v2, 0.0 }
 0x3fc   : > { %v1820_v60 = vpop.f32.mrf.mxu2 }
 0x3fd   : > { %v1851_v15 = vmul.f32 %v3382_v31, %v1820_v60 }
 0x3ff   : > { %v1871_v3 = vadd.f32 %v3388_v5, %v1851_v15 }
 0x401   : > { %v1887_v6 = vmax.f32 %v1871_v3, 0.0 }
 0x403   : > { %v1898_v22 = vpack.c.bf16 %v1887_v6, %v1886_v4 }
 0x404   : > { %v1823_v9 = vpop.f32.mrf.mxu2 }
 0x405   : > { %1998 = vmatmul.bf16.gmra.mxu3 %v1898_v22  ;;  %v1852_v11 = vmul.f32 %v3382_v31, %v1823_v9 }
 0x407   : > { %v1872_v13 = vadd.f32 %v3388_v5, %v1852_v11 }
 0x409   : > { %v1888_v19 = vmax.f32 %v1872_v13, 0.0 }
 0x40c   : > { %v1825_v12 = vpop.f32.mrf.mxu2 }
 0x40d   : > { %v1853_v16 = vmul.f32 %v3382_v31, %v1825_v12 }
 0x40f   : > { %v1873_v37 = vadd.f32 %v3388_v5, %v1853_v16 }
 0x411   : > { %v1889_v35 = vmax.f32 %v1873_v37, 0.0 }
 0x413   : > { %v1899_v20 = vpack.c.bf16 %v1889_v35, %v1888_v19 }
 0x414   : > { %v1828_v44 = vpop.f32.mrf.mxu2 }
 0x415   : > { %2003 = vmatmul.bf16.gmra.mxu3 %v1899_v20  ;;  %v1854_v24 = vmul.f32 %v3382_v31, %v1828_v44 }
 0x417   : > { %v1874_v32 = vadd.f32 %v3388_v5, %v1854_v24 }
 0x419   : > { %v1890_v55 = vmax.f32 %v1874_v32, 0.0 }
 0x41c   : > { %v1830_v25 = vpop.f32.mrf.mxu2 }
 0x41d   : > { %v1855_v33 = vmul.f32 %v3382_v31, %v1830_v25 }
 0x41f   : > { %v1875_v7 = vadd.f32 %v3388_v5, %v1855_v33 }
 0x421   : > { %v1891_v52 = vmax.f32 %v1875_v7, 0.0 }
 0x423   : > { %v1900_v47 = vpack.c.bf16 %v1891_v52, %v1890_v55 }
 0x424   : > { %v1833_v62 = vpop.f32.mrf.mxu2 }
 0x425   : > { %2008 = vmatmul.bf16.gmra.mxu3 %v1900_v47  ;;  %v1856_v58 = vmul.f32 %v3382_v31, %v1833_v62 }
 0x427   : > { %v1876_v17 = vadd.f32 %v3388_v5, %v1856_v58 }
 0x429   : > { %v1892_v10 = vmax.f32 %v1876_v17, 0.0 }
 0x42c   : > { %v1835_v27 = vpop.f32.mrf.mxu2 }
 0x42d   : > { %v1857_v23 = vmul.f32 %v3382_v31, %v1835_v27 }
 0x42f   : > { %v1877_v26 = vadd.f32 %v3388_v5, %v1857_v23 }
 0x431   : > { %v1893_v1 = vmax.f32 %v1877_v26, 0.0 }
 0x433   : > { %v1901_v28 = vpack.c.bf16 %v1893_v1, %v1892_v10 }
 0x435   : > { %2013 = vmatmul.bf16.gmra.mxu3 %v1901_v28 }
 0x448   : > { %v1979_v21 = vpop.f32.mrf.mxu3 }
 0x449   : > { %v1980_v29 = vadd.f32 %v2778_v18, %v1979_v21 }
 0x44b   : > { %2019 = vst [vmem:[%s3427_s18] sm:$0xff] %v1980_v29 }
 0x450   : > { %v1981_v31 = vpop.f32.mrf.mxu3 }
 0x451   : > { %v1982_v5 = vadd.f32 %v2778_v18, %v1981_v31 }
 0x453   : > { %2020 = vst [vmem:[%s3427_s18 + $0x8] sm:$0xff] %v1982_v5 }
 0x458   : > { %v1984_v14 = vpop.f32.mrf.mxu3 }
 0x459   : > { %v1985_v36 = vadd.f32 %v2778_v18, %v1984_v14 }
 0x45b   : > { %2021 = vst [vmem:[%s3427_s18 + $0x10] sm:$0xff] %v1985_v36 }
 0x460   : > { %v1986_v30 = vpop.f32.mrf.mxu3 }
 0x461   : > { %v1987_v39 = vadd.f32 %v2778_v18, %v1986_v30 }
 0x463   : > { %2022 = vst [vmem:[%s3427_s18 + $0x18] sm:$0xff] %v1987_v39 }
 0x468   : > { %v1989_v34 = vpop.f32.mrf.mxu3 }
 0x469   : > { %v1990_v38 = vadd.f32 %v2778_v18, %v1989_v34 }
 0x46b   : > { %2023 = vst [vmem:[%s3427_s18 + $0x20] sm:$0xff] %v1990_v38 }
 0x470   : > { %v1991_v40 = vpop.f32.mrf.mxu3 }
 0x471   : > { %v1992_v41 = vadd.f32 %v2778_v18, %v1991_v40 }
 0x473   : > { %2024 = vst [vmem:[%s3427_s18 + $0x28] sm:$0xff] %v1992_v41 }
 0x478   : > { %v1994_v49 = vpop.f32.mrf.mxu3 }
 0x479   : > { %v1995_v42 = vadd.f32 %v2778_v18, %v1994_v49 }
 0x47b   : > { %2025 = vst [vmem:[%s3427_s18 + $0x30] sm:$0xff] %v1995_v42 }
 0x480   : > { %v1996_v43 = vpop.f32.mrf.mxu3 }
 0x481   : > { %v1997_v56 = vadd.f32 %v2778_v18, %v1996_v43 }
 0x483   : > { %2026 = vst [vmem:[%s3427_s18 + $0x38] sm:$0xff] %v1997_v56 }
 0x488   : > { %v1999_v45 = vpop.f32.mrf.mxu3 }
 0x489   : > { %v2000_v46 = vadd.f32 %v2778_v18, %v1999_v45 }
 0x48b   : > { %2027 = vst [vmem:[%s3427_s18 + $0x40] sm:$0xff] %v2000_v46 }
 0x490   : > { %v2001_v48 = vpop.f32.mrf.mxu3 }
 0x491   : > { %v2002_v57 = vadd.f32 %v2778_v18, %v2001_v48 }
 0x493   : > { %2028 = vst [vmem:[%s3427_s18 + $0x48] sm:$0xff] %v2002_v57 }
 0x498   : > { %v2004_v63 = vpop.f32.mrf.mxu3 }
 0x499   : > { %v2005_v50 = vadd.f32 %v2778_v18, %v2004_v63 }
 0x49b   : > { %2029 = vst [vmem:[%s3427_s18 + $0x50] sm:$0xff] %v2005_v50 }
 0x4a0   : > { %v2006_v51 = vpop.f32.mrf.mxu3 }
 0x4a1   : > { %v2007_v53 = vadd.f32 %v2778_v18, %v2006_v51 }
 0x4a3   : > { %2030 = vst [vmem:[%s3427_s18 + $0x58] sm:$0xff] %v2007_v53 }
 0x4a8   : > { %v2009_v0 = vpop.f32.mrf.mxu3 }
 0x4a9   : > { %v2010_v54 = vadd.f32 %v2778_v18, %v2009_v0 }
 0x4ab   : > { %2031 = vst [vmem:[%s3427_s18 + $0x60] sm:$0xff] %v2010_v54 }
 0x4b0   : > { %v2011_v59 = vpop.f32.mrf.mxu3 }
 0x4b1   : > { %v2012_v8 = vadd.f32 %v2778_v18, %v2011_v59 }
 0x4b3   : > { %2032 = vst [vmem:[%s3427_s18 + $0x68] sm:$0xff] %v2012_v8 }
 0x4b8   : > { %v2014_v61 = vpop.f32.mrf.mxu3 }
 0x4b9   : > { %v2015_v60 = vadd.f32 %v2778_v18, %v2014_v61 }
 0x4bb   : > { %2033 = vst [vmem:[%s3427_s18 + $0x70] sm:$0xff] %v2015_v60 }
 0x4c0   : > { %v2016_v2 = vpop.f32.mrf.mxu3 }
 0x4c1   : > { %v2017_v15 = vadd.f32 %v2778_v18, %v2016_v2 }
 0x4c3   : > { %2034 = vst [vmem:[%s3427_s18 + $0x78] sm:$0xff] %v2017_v15 }
 0x4c4   : > { %2926 = shalt.err (!%p2923_p8)
}
 0x4c5   : > { %s2982_s24 = smov 128   ;;  %s2983_s14 = smov 8  }
 0x4c6   : > { %2702 = dma.vmem_to_hbm [thread:$0]  (%p3087_p5), %s2049_s19, 2048, %s2051_s20, %s2036_s29, %s2982_s24, %s2982_s24, %s2983_s14  }
 0x4c7 PF: > { %s3512_s15 = sld [smem:[#allocation18_spill]] }
 0x4c8   : > { %s3513_s18 = sld [smem:[#allocation16_spill]] }
 0x4cd   : > { %p2729_p9 = scmp.ge.s32.totalorder %s3512_s15, 2 }
 0x4ce   : > { %s2065_s28 = sand.u32 1, %s3513_s18  }
 0x4cf   : > { %p2718_p10 = pnand %p2729_p9, %p3091_p6  ;;  %s2066_s16 = scalar_lea.sflag [#allocation5], %s2065_s28 }
 0x4d1   : > { %p2719_p11 = pneg %p2718_p10 }
 0x4d3   : > { %2956 = dma.done.wait (%p2719_p11), %s2066_s16, 2048  }
 0x4d4   : > { %2958 = vsyncadd (%p2719_p11), %s2066_s16, 4294965248  ;;  %s3515_s24 = sld [smem:[#allocation19_spill]]  ;;  %s3518_s21 = smov %s2965_s22 }
 0x4d5   : > { %s3516_s17 = sld [smem:[#allocation17_spill]] }
 0x4d6   : > { %s3517_s23 = sld [smem:[#allocation20_spill]] }
 0x4da   : > { %p25_p12 = scmp.ge.s32.totalorder %s3515_s24, 4  }
 0x4db   : > { %s3519_s22 = smov %s3516_s17 }
 0x4dc   :  { %27 = sbr.rel (!%p25_p12) target bundleno = 9 (0x9), region = 126 }
 0x4e1   :  { %2072 = vsyncpa [#allocation4], 1 }
 0x4e2   :  { %2074 = vsyncpa [#allocation4 + $0x1], 1 }
 0x4e3   :  { %2075 = vsyncpa [#allocation7], 1 }
 0x4e4   :  { %2076 = vsyncpa [#allocation10], 1 }
 0x4e5   :  { %2077 = vsyncpa [#allocation5], 1 }
 0x4e6   :  { %2079 = vsyncpa [#allocation5 + $0x1], 1 }

</bundles_post_ra>
